<compile_context>
chip_gen: v6e
topology: v6e:2x2x1
jax: 0.10.0
libtpu: 0.0.40
codegen_flags: <defaults>
</compile_context>

<pallas_src>
import functools

import jax
import jax.numpy as jnp
from jax.experimental import pallas as pl
from jax.experimental.pallas import tpu as pltpu

LANE = 128
SUBLANE = 8


def _round_up(n, m):
    return (n + m - 1) // m * m


def _mlp_kernel(x_ref,
                w1_ref, b1_ref,
                w2_ref, b2_ref,
                w3_ref, b3_ref,
                w4_ref, b4_ref,
                w5_ref, b5_ref,
                o_ref):
    """Whole 5-layer MLP for one batch tile; all weights resident in VMEM."""

    def linear(h, w_ref, b_ref):
        # Cast LHS to the weight dtype (no-op for f32, native bf16 MXU path
        # for bf16 params); accumulate in f32 on the MXU.
        lhs = h.astype(w_ref.dtype)
        y = jnp.dot(lhs, w_ref[...], preferred_element_type=jnp.float32)
        return y + b_ref[...]  # bias is f32; epilogue stays f32 (v5e-safe)

    h = x_ref[...]
    h = jnp.maximum(linear(h, w1_ref, b1_ref), 0.0)
    h = jnp.maximum(linear(h, w2_ref, b2_ref), 0.0)
    h = jnp.maximum(linear(h, w3_ref, b3_ref), 0.0)
    h = jnp.maximum(linear(h, w4_ref, b4_ref), 0.0)
    # final layer: no ReLU
    o_ref[...] = linear(h, w5_ref, b5_ref).astype(o_ref.dtype)


@functools.partial(jax.jit, static_argnames=("block_b", "param_dtype"))
def classifier_forward(x, params, block_b=256, param_dtype=None):
    """x: (B, input_dim). params: dict of (in,out) weights and (1,out) biases.

    Handles arbitrary B and arbitrary feature dims by zero-padding to
    TPU-friendly shapes (lane-dense, sublane-aligned) and slicing the result.
    """
    B, input_dim = x.shape
    hidden_dim = params["w1"].shape[1]
    output_dim = params["w5"].shape[1]

    w_dtype = jnp.dtype(param_dtype) if param_dtype is not None \
        else params["w1"].dtype

    # ---- padded shapes -----------------------------------------------------
    in_p = _round_up(input_dim, LANE)
    hid_p = _round_up(hidden_dim, LANE)
    out_p = _round_up(output_dim, LANE)

    block_b = max(SUBLANE, _round_up(int(block_b), SUBLANE))
    b_p = _round_up(B, block_b)
    grid = (b_p // block_b,)

    def pad2(a, rows, cols, dtype):
        a = a.astype(dtype)
        return jnp.pad(a, ((0, rows - a.shape[0]), (0, cols - a.shape[1])))

    x_p = pad2(x, b_p, in_p, x.dtype)

    layer_dims = [(in_p, hid_p), (hid_p, hid_p), (hid_p, hid_p),
                  (hid_p, hid_p), (hid_p, out_p)]
    flat_params = []
    for idx, (r, c) in enumerate(layer_dims, start=1):
        flat_params.append(pad2(params[f"w{idx}"], r, c, w_dtype))
        flat_params.append(pad2(params[f"b{idx}"], 1, c, jnp.float32))

    # ---- specs -------------------------------------------------------------
    def full_spec(shape):
        # Resident weights/biases: whole array every grid step.
        return pl.BlockSpec(shape, lambda i: tuple(0 for _ in shape))

    in_specs = [pl.BlockSpec((block_b, in_p), lambda i: (i, 0))]
    for arr in flat_params:
        in_specs.append(full_spec(arr.shape))
    out_spec = pl.BlockSpec((block_b, out_p), lambda i: (i, 0))

    # ---- explicit VMEM budget (allows large batch tiles) -------------------
    w_bytes = sum(r * c for (r, c) in layer_dims) * w_dtype.itemsize
    b_bytes = sum(c for (_, c) in layer_dims) * 4
    act_bytes = block_b * (in_p + out_p) * x.dtype.itemsize
    hid_bytes = block_b * hid_p * 4
    vmem_needed = 2 * (w_bytes + b_bytes + act_bytes) + 4 * hid_bytes
    vmem_limit = int(min(max(int(vmem_needed * 1.25), 16 * 1024 * 1024),
                         56 * 1024 * 1024))

    out_p_arr = pl.pallas_call(
        _mlp_kernel,
        out_shape=jax.ShapeDtypeStruct((b_p, out_p), x.dtype),
        grid_spec=pl.GridSpec(
            grid=grid,
            in_specs=in_specs,
            out_specs=out_spec,
        ),
        compiler_params=pltpu.CompilerParams(
            dimension_semantics=("parallel",),
            vmem_limit_bytes=vmem_limit,
        ),
    )(x_p, *flat_params)

    return out_p_arr[:B, :output_dim]


def init_params(key, input_dim, hidden_dim, output_dim):
    """Deterministic init mimicking nn.Linear (uniform +/- 1/sqrt(fan_in)).

    Weights stored as (in_features, out_features) -- transposed relative to
    PyTorch's (out, in) -- so the kernel does x @ W.  Biases are (1, out)."""
    dims = [(input_dim, hidden_dim),
            (hidden_dim, hidden_dim),
            (hidden_dim, hidden_dim),
            (hidden_dim, hidden_dim),
            (hidden_dim, output_dim)]
    params = {}
    for idx, (fan_in, fan_out) in enumerate(dims, start=1):
        key, kw, kb = jax.random.split(key, 3)
        bound = 1.0 / jnp.sqrt(float(fan_in))
        params[f"w{idx}"] = jax.random.uniform(
            kw, (fan_in, fan_out), jnp.float32, -bound, bound)
        params[f"b{idx}"] = jax.random.uniform(
            kb, (1, fan_out), jnp.float32, -bound, bound)
    return params


def classifier_reference(x, params):
    """Pure-JAX reference of the same forward pass."""
    h = x
    for idx in range(1, 5):
        h = jnp.maximum(h @ params[f"w{idx}"] + params[f"b{idx}"], 0.0)
    return h @ params["w5"] + params["b5"]


if __name__ == "__main__":
    input_dim, hidden_dim, output_dim = 16, 32, 8
    batch = 512  # two 256-row tiles -> both v7x TensorCores get work

    key = jax.random.PRNGKey(0)
    key, kx = jax.random.split(key)
    x = jax.random.normal(kx, (batch, input_dim), jnp.float32)
    params = init_params(key, input_dim, hidden_dim, output_dim)

    out = classifier_forward(x, params)  # block_b=256, f32 params
    out = jax.block_until_ready(out)

    ref = classifier_reference(x, params)
    assert out.shape == (batch, output_dim)
    assert jnp.allclose(out, ref, atol=1e-4, rtol=1e-4), "mismatch vs reference"

    # Also exercise a ragged batch (padding path), small tile.
    out_small = classifier_forward(x[:37], params, block_b=64)
    out_small = jax.block_until_ready(out_small)
    assert jnp.allclose(out_small, ref[:37], atol=1e-4, rtol=1e-4)

    print("KERNEL_OK")
</pallas_src>

<mosaic_0001>
module attributes {stable_mosaic.version = 11 : i64} {
  func.func @_mlp_kernel(%arg0: i32, %arg1: memref<256x128xf32, #tpu.memory_space<vmem>>, %arg2: memref<128x128xf32, #tpu.memory_space<vmem>>, %arg3: memref<1x128xf32, #tpu.memory_space<vmem>>, %arg4: memref<128x128xf32, #tpu.memory_space<vmem>>, %arg5: memref<1x128xf32, #tpu.memory_space<vmem>>, %arg6: memref<128x128xf32, #tpu.memory_space<vmem>>, %arg7: memref<1x128xf32, #tpu.memory_space<vmem>>, %arg8: memref<128x128xf32, #tpu.memory_space<vmem>>, %arg9: memref<1x128xf32, #tpu.memory_space<vmem>>, %arg10: memref<128x128xf32, #tpu.memory_space<vmem>>, %arg11: memref<1x128xf32, #tpu.memory_space<vmem>>, %arg12: memref<256x128xf32, #tpu.memory_space<vmem>>) attributes {dimension_semantics = [#tpu.dimension_semantics<parallel>], iteration_bounds = array<i64: 2>, scalar_prefetch = 0 : i64, scratch_operands = 0 : i64, tpu.core_type = #tpu.core_type<tc>, window_params = [{transform_indices = @transform_0, window_bounds = array<i64: 256, 128>}, {pipeline_mode = #tpu.pipeline_mode<synchronous>, transform_indices = @transform_1, window_bounds = array<i64: 128, 128>}, {pipeline_mode = #tpu.pipeline_mode<synchronous>, transform_indices = @transform_2, window_bounds = array<i64: 1, 128>}, {pipeline_mode = #tpu.pipeline_mode<synchronous>, transform_indices = @transform_3, window_bounds = array<i64: 128, 128>}, {pipeline_mode = #tpu.pipeline_mode<synchronous>, transform_indices = @transform_4, window_bounds = array<i64: 1, 128>}, {pipeline_mode = #tpu.pipeline_mode<synchronous>, transform_indices = @transform_5, window_bounds = array<i64: 128, 128>}, {pipeline_mode = #tpu.pipeline_mode<synchronous>, transform_indices = @transform_6, window_bounds = array<i64: 1, 128>}, {pipeline_mode = #tpu.pipeline_mode<synchronous>, transform_indices = @transform_7, window_bounds = array<i64: 128, 128>}, {pipeline_mode = #tpu.pipeline_mode<synchronous>, transform_indices = @transform_8, window_bounds = array<i64: 1, 128>}, {pipeline_mode = #tpu.pipeline_mode<synchronous>, transform_indices = @transform_9, window_bounds = array<i64: 128, 128>}, {pipeline_mode = #tpu.pipeline_mode<synchronous>, transform_indices = @transform_10, window_bounds = array<i64: 1, 128>}, {transform_indices = @transform_11, window_bounds = array<i64: 256, 128>}]} {
    %c0 = arith.constant 0 : index
    %c0_0 = arith.constant 0 : index
    %0 = vector.load %arg1[%c0, %c0_0] : memref<256x128xf32, #tpu.memory_space<vmem>>, vector<256x128xf32>
    %c0_1 = arith.constant 0 : index
    %c0_2 = arith.constant 0 : index
    %1 = vector.load %arg2[%c0_1, %c0_2] : memref<128x128xf32, #tpu.memory_space<vmem>>, vector<128x128xf32>
    %cst = arith.constant dense<0.000000e+00> : vector<256x128xf32>
    %2 = tpu.matmul %0, %1, %cst {dimension_numbers = #tpu.dot_dimension_numbers<[1], [0], [0], [1], [0, 0, 1, 1], [], []>} : vector<256x128xf32>, vector<128x128xf32>, vector<256x128xf32> -> vector<256x128xf32>
    %c0_3 = arith.constant 0 : index
    %c0_4 = arith.constant 0 : index
    %3 = vector.load %arg3[%c0_3, %c0_4] : memref<1x128xf32, #tpu.memory_space<vmem>>, vector<1x128xf32>
    %4 = vector.broadcast %3 : vector<1x128xf32> to vector<256x128xf32>
    %5 = arith.addf %2, %4 : vector<256x128xf32>
    %cst_5 = arith.constant 0.000000e+00 : f32
    %6 = vector.broadcast %cst_5 : f32 to vector<256x128xf32>
    %7 = arith.maximumf %5, %6 : vector<256x128xf32>
    %c0_6 = arith.constant 0 : index
    %c0_7 = arith.constant 0 : index
    %8 = vector.load %arg4[%c0_6, %c0_7] : memref<128x128xf32, #tpu.memory_space<vmem>>, vector<128x128xf32>
    %cst_8 = arith.constant dense<0.000000e+00> : vector<256x128xf32>
    %9 = tpu.matmul %7, %8, %cst_8 {dimension_numbers = #tpu.dot_dimension_numbers<[1], [0], [0], [1], [0, 0, 1, 1], [], []>} : vector<256x128xf32>, vector<128x128xf32>, vector<256x128xf32> -> vector<256x128xf32>
    %c0_9 = arith.constant 0 : index
    %c0_10 = arith.constant 0 : index
    %10 = vector.load %arg5[%c0_9, %c0_10] : memref<1x128xf32, #tpu.memory_space<vmem>>, vector<1x128xf32>
    %11 = vector.broadcast %10 : vector<1x128xf32> to vector<256x128xf32>
    %12 = arith.addf %9, %11 : vector<256x128xf32>
    %cst_11 = arith.constant 0.000000e+00 : f32
    %13 = vector.broadcast %cst_11 : f32 to vector<256x128xf32>
    %14 = arith.maximumf %12, %13 : vector<256x128xf32>
    %c0_12 = arith.constant 0 : index
    %c0_13 = arith.constant 0 : index
    %15 = vector.load %arg6[%c0_12, %c0_13] : memref<128x128xf32, #tpu.memory_space<vmem>>, vector<128x128xf32>
    %cst_14 = arith.constant dense<0.000000e+00> : vector<256x128xf32>
    %16 = tpu.matmul %14, %15, %cst_14 {dimension_numbers = #tpu.dot_dimension_numbers<[1], [0], [0], [1], [0, 0, 1, 1], [], []>} : vector<256x128xf32>, vector<128x128xf32>, vector<256x128xf32> -> vector<256x128xf32>
    %c0_15 = arith.constant 0 : index
    %c0_16 = arith.constant 0 : index
    %17 = vector.load %arg7[%c0_15, %c0_16] : memref<1x128xf32, #tpu.memory_space<vmem>>, vector<1x128xf32>
    %18 = vector.broadcast %17 : vector<1x128xf32> to vector<256x128xf32>
    %19 = arith.addf %16, %18 : vector<256x128xf32>
    %cst_17 = arith.constant 0.000000e+00 : f32
    %20 = vector.broadcast %cst_17 : f32 to vector<256x128xf32>
    %21 = arith.maximumf %19, %20 : vector<256x128xf32>
    %c0_18 = arith.constant 0 : index
    %c0_19 = arith.constant 0 : index
    %22 = vector.load %arg8[%c0_18, %c0_19] : memref<128x128xf32, #tpu.memory_space<vmem>>, vector<128x128xf32>
    %cst_20 = arith.constant dense<0.000000e+00> : vector<256x128xf32>
    %23 = tpu.matmul %21, %22, %cst_20 {dimension_numbers = #tpu.dot_dimension_numbers<[1], [0], [0], [1], [0, 0, 1, 1], [], []>} : vector<256x128xf32>, vector<128x128xf32>, vector<256x128xf32> -> vector<256x128xf32>
    %c0_21 = arith.constant 0 : index
    %c0_22 = arith.constant 0 : index
    %24 = vector.load %arg9[%c0_21, %c0_22] : memref<1x128xf32, #tpu.memory_space<vmem>>, vector<1x128xf32>
    %25 = vector.broadcast %24 : vector<1x128xf32> to vector<256x128xf32>
    %26 = arith.addf %23, %25 : vector<256x128xf32>
    %cst_23 = arith.constant 0.000000e+00 : f32
    %27 = vector.broadcast %cst_23 : f32 to vector<256x128xf32>
    %28 = arith.maximumf %26, %27 : vector<256x128xf32>
    %c0_24 = arith.constant 0 : index
    %c0_25 = arith.constant 0 : index
    %29 = vector.load %arg10[%c0_24, %c0_25] : memref<128x128xf32, #tpu.memory_space<vmem>>, vector<128x128xf32>
    %cst_26 = arith.constant dense<0.000000e+00> : vector<256x128xf32>
    %30 = tpu.matmul %28, %29, %cst_26 {dimension_numbers = #tpu.dot_dimension_numbers<[1], [0], [0], [1], [0, 0, 1, 1], [], []>} : vector<256x128xf32>, vector<128x128xf32>, vector<256x128xf32> -> vector<256x128xf32>
    %c0_27 = arith.constant 0 : index
    %c0_28 = arith.constant 0 : index
    %31 = vector.load %arg11[%c0_27, %c0_28] : memref<1x128xf32, #tpu.memory_space<vmem>>, vector<1x128xf32>
    %32 = vector.broadcast %31 : vector<1x128xf32> to vector<256x128xf32>
    %33 = arith.addf %30, %32 : vector<256x128xf32>
    %c0_29 = arith.constant 0 : index
    %c0_30 = arith.constant 0 : index
    %34 = vector.load %arg12[%c0_29, %c0_30] : memref<256x128xf32, #tpu.memory_space<vmem>>, vector<256x128xf32>
    tpu.vector_store %arg12[%c0_29, %c0_30], %33 {strides = array<i32>} : memref<256x128xf32, #tpu.memory_space<vmem>>, vector<256x128xf32>,
    return
  }
  func.func @transform_0(%arg0: i32) -> (i32, i32) {
    %c0_i32 = arith.constant 0 : i32
    %c0_i32_0 = arith.constant 0 : i32
    return %arg0, %c0_i32 : i32, i32
  }
  func.func @transform_1(%arg0: i32) -> (i32, i32) {
    %c0_i32 = arith.constant 0 : i32
    %c0_i32_0 = arith.constant 0 : i32
    %c0_i32_1 = arith.constant 0 : i32
    return %c0_i32, %c0_i32_0 : i32, i32
  }
  func.func @transform_2(%arg0: i32) -> (i32, i32) {
    %c0_i32 = arith.constant 0 : i32
    %c0_i32_0 = arith.constant 0 : i32
    %c0_i32_1 = arith.constant 0 : i32
    return %c0_i32, %c0_i32_0 : i32, i32
  }
  func.func @transform_3(%arg0: i32) -> (i32, i32) {
    %c0_i32 = arith.constant 0 : i32
    %c0_i32_0 = arith.constant 0 : i32
    %c0_i32_1 = arith.constant 0 : i32
    return %c0_i32, %c0_i32_0 : i32, i32
  }
  func.func @transform_4(%arg0: i32) -> (i32, i32) {
    %c0_i32 = arith.constant 0 : i32
    %c0_i32_0 = arith.constant 0 : i32
    %c0_i32_1 = arith.constant 0 : i32
    return %c0_i32, %c0_i32_0 : i32, i32
  }
  func.func @transform_5(%arg0: i32) -> (i32, i32) {
    %c0_i32 = arith.constant 0 : i32
    %c0_i32_0 = arith.constant 0 : i32
    %c0_i32_1 = arith.constant 0 : i32
    return %c0_i32, %c0_i32_0 : i32, i32
  }
  func.func @transform_6(%arg0: i32) -> (i32, i32) {
    %c0_i32 = arith.constant 0 : i32
    %c0_i32_0 = arith.constant 0 : i32
    %c0_i32_1 = arith.constant 0 : i32
    return %c0_i32, %c0_i32_0 : i32, i32
  }
  func.func @transform_7(%arg0: i32) -> (i32, i32) {
    %c0_i32 = arith.constant 0 : i32
    %c0_i32_0 = arith.constant 0 : i32
    %c0_i32_1 = arith.constant 0 : i32
    return %c0_i32, %c0_i32_0 : i32, i32
  }
  func.func @transform_8(%arg0: i32) -> (i32, i32) {
    %c0_i32 = arith.constant 0 : i32
    %c0_i32_0 = arith.constant 0 : i32
    %c0_i32_1 = arith.constant 0 : i32
    return %c0_i32, %c0_i32_0 : i32, i32
  }
  func.func @transform_9(%arg0: i32) -> (i32, i32) {
    %c0_i32 = arith.constant 0 : i32
    %c0_i32_0 = arith.constant 0 : i32
    %c0_i32_1 = arith.constant 0 : i32
    return %c0_i32, %c0_i32_0 : i32, i32
  }
  func.func @transform_10(%arg0: i32) -> (i32, i32) {
    %c0_i32 = arith.constant 0 : i32
    %c0_i32_0 = arith.constant 0 : i32
    %c0_i32_1 = arith.constant 0 : i32
    return %c0_i32, %c0_i32_0 : i32, i32
  }
  func.func @transform_11(%arg0: i32) -> (i32, i32) {
    %c0_i32 = arith.constant 0 : i32
    %c0_i32_0 = arith.constant 0 : i32
    return %arg0, %c0_i32 : i32, i32
  }
}

</mosaic_0001>

<bundles_post_ra>
// kernel: classifier_forward.1
= control target key start
LH: loop header
LB: loop body
LE: loop exit
PB: predicated region body
PF: predicated region fallthrough
CT: control target
= control target key end

     0   :  { %s2642_s17 = smov 0   ;;  %s3168_s0 = inlined_call_operand.vmem [shape: f32[512,128], index: 0, kind: input, shape index: {}]   ;;  %s3169_s1 = inlined_call_operand.vmem [shape: f32[128,128], index: 1, kind: input, shape index: {}]   ;;  %s3170_s2 = inlined_call_operand.vmem [shape: f32[1,128], index: 2, kind: input, shape index: {}]   ;;  %s3171_s3 = inlined_call_operand.vmem [shape: f32[128,128], index: 3, kind: input, shape index: {}]   ;;  %s3172_s4 = inlined_call_operand.vmem [shape: f32[1,128], index: 4, kind: input, shape index: {}]   ;;  %s3173_s5 = inlined_call_operand.vmem [shape: f32[128,128], index: 5, kind: input, shape index: {}]   ;;  %s3174_s6 = inlined_call_operand.vmem [shape: f32[1,128], index: 6, kind: input, shape index: {}]   ;;  %s3175_s7 = inlined_call_operand.vmem [shape: f32[128,128], index: 7, kind: input, shape index: {}]   ;;  %s3176_s8 = inlined_call_operand.vmem [shape: f32[1,128], index: 8, kind: input, shape index: {}]   ;;  %s3177_s9 = inlined_call_operand.vmem [shape: f32[128,128], index: 9, kind: input, shape index: {}]   ;;  %s3178_s10 = inlined_call_operand.vmem [shape: f32[1,128], index: 10, kind: input, shape index: {}]   ;;  %s3179_s11 = inlined_call_operand.vmem [shape: f32[512,128], index: 11, kind: output, shape index: {}]  }
   0x1 LB: > { %s1878_s18 = sadd.s32 4294967295, %s2580_s17   ;;  %p1882_p0 = scmp.ge.s32.totalorder %s2580_s17, 1  ;;  %s2580_s17 = sphi %s2642_s17, %s21_s17  }
   0x2   : > { %p338_p1 = scmp.lt.s32.totalorder %s2580_s17, 3 }
   0x4   : > { %p339_p2 = pnand %p1882_p0, %p338_p1 }
   0x5   : > { %s1883_s23 = sshll.u32 (!%p339_p2), %s1878_s18, 5 }
   0x6   : > { %342 = sbr.rel (%p339_p2) target bundleno = 1102 (0x44e), region = 64  ;;  %p379_p3 = scmp.lt.s32.totalorder (!%p339_p2), %s1883_s23, 63 }
   0xb   : > { %v437_v0 = vld [vmem:[%s3169_s1 + $0x78] sm:$0xff]  ;;  %v436_v1 = vld [vmem:[%s3169_s1 + $0x70] sm:$0xff]  ;;  %v435_v2 = vld [vmem:[%s3169_s1 + $0x68] sm:$0xff]  ;;  %s3181_s23 = smov (!%p379_p3, %s1883_s23), 63 }
   0xc   : > { %2134 = vmatprep.subr.mxu0 %v437_v0  ;;  %2534 = vmatprep.subr.mxu1 %v437_v0  ;;  %v434_v3 = vld [vmem:[%s3169_s1 + $0x60] sm:$0xff]  ;;  %s1884_s28 = sshll.u32 %s3181_s23, 3  ;;  %v433_v4 = vld [vmem:[%s3169_s1 + $0x58] sm:$0xff]  ;;  %v432_v6 = vld [vmem:[%s3169_s1 + $0x50] sm:$0xff] }
   0xd   : > { %2135 = vmatpush3.msra.mxu0 %v437_v0  ;;  %2550 = vmatpush3.msra.mxu1 %v437_v0  ;;  %s2673_s14 = scalar_lea.vmem %s3168_s0, %s1884_s28  ;;  %v431_v7 = vld [vmem:[%s3169_s1 + $0x48] sm:$0xff]  ;;  %v430_v8 = vld [vmem:[%s3169_s1 + $0x40] sm:$0xff]  ;;  %v429_v9 = vld [vmem:[%s3169_s1 + $0x38] sm:$0xff]  ;;  %s3099_s21 = scalar_lea.vmem %s3179_s11, %s1884_s28 }
   0xe   : > { %2136 = vmatprep.subr.mxu0 %v436_v1  ;;  %2535 = vmatprep.subr.mxu1 %v436_v1  ;;  %v390_v5 = vld [vmem:[%s2673_s14] sm:$0xff]  ;;  %v428_v10 = vld [vmem:[%s3169_s1 + $0x30] sm:$0xff]  ;;  %v427_v11 = vld [vmem:[%s3169_s1 + $0x28] sm:$0xff] }
   0xf   : > { %2137 = vmatpush3.msra.mxu0 %v436_v1  ;;  %2551 = vmatpush3.msra.mxu1 %v436_v1  ;;  %v426_v12 = vld [vmem:[%s3169_s1 + $0x20] sm:$0xff]  ;;  %v425_v13 = vld [vmem:[%s3169_s1 + $0x18] sm:$0xff]  ;;  %v424_v14 = vld [vmem:[%s3169_s1 + $0x10] sm:$0xff] }
  0x10   : > { %2138 = vmatprep.subr.mxu0 %v435_v2  ;;  %2536 = vmatprep.subr.mxu1 %v435_v2  ;;  %v423_v15 = vld [vmem:[%s3169_s1 + $0x8] sm:$0xff]  ;;  %v422_v16 = vld [vmem:[%s3169_s1] sm:$0xff]  ;;  %v392_v18 = vld [vmem:[%s2673_s14 + $0x10] sm:$0xff] }
  0x11   : > { %2139 = vmatpush3.msra.mxu0 %v435_v2  ;;  %2552 = vmatpush3.msra.mxu1 %v435_v2  ;;  %v391_v17 = vld [vmem:[%s2673_s14 + $0x8] sm:$0xff]  ;;  %v406_v19 = vld [vmem:[%s2673_s14 + $0x80] sm:$0xff]  ;;  %v717_v21 = vld [vmem:[%s3171_s3 + $0x78] sm:$0xff] }
  0x12   : > { %2140 = vmatprep.subr.mxu0 %v434_v3  ;;  %2537 = vmatprep.subr.mxu1 %v434_v3  ;;  %v407_v20 = vld [vmem:[%s2673_s14 + $0x88] sm:$0xff]  ;;  %v408_v22 = vld [vmem:[%s2673_s14 + $0x90] sm:$0xff]  ;;  %v393_v23 = vld [vmem:[%s2673_s14 + $0x18] sm:$0xff] }
  0x13   : > { %2141 = vmatpush3.msra.mxu0 %v434_v3  ;;  %2166 = vmatprep.mubr.f32.mxu0 %v390_v5  ;;  %v716_v24 = vld [vmem:[%s3171_s3 + $0x70] sm:$0xff]  ;;  %v394_v25 = vld [vmem:[%s2673_s14 + $0x20] sm:$0xff]  ;;  %v409_v26 = vld [vmem:[%s2673_s14 + $0x98] sm:$0xff] }
  0x14   : > { %2142 = vmatprep.subr.mxu0 %v433_v4  ;;  %2553 = vmatpush3.msra.mxu1 %v434_v3  ;;  %v715_v27 = vld [vmem:[%s3171_s3 + $0x68] sm:$0xff]  ;;  %v410_v28 = vld [vmem:[%s2673_s14 + $0xa0] sm:$0xff]  ;;  %v396_v31 = vld [vmem:[%s2673_s14 + $0x30] sm:$0xff] }
  0x15   : > { %2143 = vmatpush3.msra.mxu0 %v433_v4  ;;  %2538 = vmatprep.subr.mxu1 %v433_v4  ;;  %v395_v29 = vld [vmem:[%s2673_s14 + $0x28] sm:$0xff]  ;;  %v714_v30 = vld [vmem:[%s3171_s3 + $0x60] sm:$0xff]  ;;  %v713_v33 = vld [vmem:[%s3171_s3 + $0x58] sm:$0xff] }
  0x16   : > { %2144 = vmatprep.subr.mxu0 %v432_v6  ;;  %2554 = vmatpush3.msra.mxu1 %v433_v4  ;;  %v411_v32 = vld [vmem:[%s2673_s14 + $0xa8] sm:$0xff]  ;;  %v412_v34 = vld [vmem:[%s2673_s14 + $0xb0] sm:$0xff]  ;;  %v397_v35 = vld [vmem:[%s2673_s14 + $0x38] sm:$0xff] }
  0x17   : > { %2145 = vmatpush3.msra.mxu0 %v432_v6  ;;  %2539 = vmatprep.subr.mxu1 %v432_v6  ;;  %v712_v36 = vld [vmem:[%s3171_s3 + $0x50] sm:$0xff]  ;;  %v398_v37 = vld [vmem:[%s2673_s14 + $0x40] sm:$0xff]  ;;  %v413_v38 = vld [vmem:[%s2673_s14 + $0xb8] sm:$0xff] }
  0x18   : > { %2146 = vmatprep.subr.mxu0 %v431_v7  ;;  %2555 = vmatpush3.msra.mxu1 %v432_v6  ;;  %v711_v39 = vld [vmem:[%s3171_s3 + $0x48] sm:$0xff]  ;;  %v414_v40 = vld [vmem:[%s2673_s14 + $0xc0] sm:$0xff]  ;;  %v400_v43 = vld [vmem:[%s2673_s14 + $0x50] sm:$0xff] }
  0x19   : > { %2147 = vmatpush3.msra.mxu0 %v431_v7  ;;  %2540 = vmatprep.subr.mxu1 %v431_v7  ;;  %v399_v41 = vld [vmem:[%s2673_s14 + $0x48] sm:$0xff]  ;;  %v710_v42 = vld [vmem:[%s3171_s3 + $0x40] sm:$0xff]  ;;  %v709_v45 = vld [vmem:[%s3171_s3 + $0x38] sm:$0xff] }
  0x1a   : > { %2148 = vmatprep.subr.mxu0 %v430_v8  ;;  %2556 = vmatpush3.msra.mxu1 %v431_v7  ;;  %v415_v44 = vld [vmem:[%s2673_s14 + $0xc8] sm:$0xff]  ;;  %v416_v46 = vld [vmem:[%s2673_s14 + $0xd0] sm:$0xff]  ;;  %v401_v47 = vld [vmem:[%s2673_s14 + $0x58] sm:$0xff] }
  0x1b   : > { %2149 = vmatpush3.msra.mxu0 %v430_v8  ;;  %2541 = vmatprep.subr.mxu1 %v430_v8  ;;  %v708_v48 = vld [vmem:[%s3171_s3 + $0x30] sm:$0xff]  ;;  %v402_v49 = vld [vmem:[%s2673_s14 + $0x60] sm:$0xff]  ;;  %v417_v50 = vld [vmem:[%s2673_s14 + $0xd8] sm:$0xff] }
  0x1c   : > { %2150 = vmatprep.subr.mxu0 %v429_v9  ;;  %2557 = vmatpush3.msra.mxu1 %v430_v8  ;;  %v707_v51 = vld [vmem:[%s3171_s3 + $0x28] sm:$0xff]  ;;  %v418_v52 = vld [vmem:[%s2673_s14 + $0xe0] sm:$0xff]  ;;  %v404_v55 = vld [vmem:[%s2673_s14 + $0x70] sm:$0xff] }
  0x1d   : > { %2151 = vmatpush3.msra.mxu0 %v429_v9  ;;  %2542 = vmatprep.subr.mxu1 %v429_v9  ;;  %v403_v53 = vld [vmem:[%s2673_s14 + $0x68] sm:$0xff]  ;;  %v706_v54 = vld [vmem:[%s3171_s3 + $0x20] sm:$0xff]  ;;  %v705_v57 = vld [vmem:[%s3171_s3 + $0x18] sm:$0xff] }
  0x1e   : > { %2152 = vmatprep.subr.mxu0 %v428_v10  ;;  %2558 = vmatpush3.msra.mxu1 %v429_v9  ;;  %v419_v56 = vld [vmem:[%s2673_s14 + $0xe8] sm:$0xff]  ;;  %v420_v58 = vld [vmem:[%s2673_s14 + $0xf0] sm:$0xff]  ;;  %v405_v59 = vld [vmem:[%s2673_s14 + $0x78] sm:$0xff] }
  0x1f   : > { %2153 = vmatpush3.msra.mxu0 %v428_v10  ;;  %2543 = vmatprep.subr.mxu1 %v428_v10  ;;  %v421_v60 = vld [vmem:[%s2673_s14 + $0xf8] sm:$0xff]  ;;  %v704_v61 = vld [vmem:[%s3171_s3 + $0x10] sm:$0xff]  ;;  %v703_v62 = vld [vmem:[%s3171_s3 + $0x8] sm:$0xff] }
  0x20   : > { %2154 = vmatprep.subr.mxu0 %v427_v11  ;;  %2559 = vmatpush3.msra.mxu1 %v428_v10  ;;  %v702_v63 = vld [vmem:[%s3171_s3] sm:$0xff]  ;;  %v997_v0 = vld [vmem:[%s3173_s5 + $0x78] sm:$0xff]  ;;  %v996_v1 = vld [vmem:[%s3173_s5 + $0x70] sm:$0xff] }
  0x21   : > { %2155 = vmatpush3.msra.mxu0 %v427_v11  ;;  %2544 = vmatprep.subr.mxu1 %v427_v11  ;;  %v995_v2 = vld [vmem:[%s3173_s5 + $0x68] sm:$0xff]  ;;  %v994_v3 = vld [vmem:[%s3173_s5 + $0x60] sm:$0xff]  ;;  %v993_v4 = vld [vmem:[%s3173_s5 + $0x58] sm:$0xff] }
  0x22   : > { %2156 = vmatprep.subr.mxu0 %v426_v12  ;;  %2560 = vmatpush3.msra.mxu1 %v427_v11  ;;  %v992_v5 = vld [vmem:[%s3173_s5 + $0x50] sm:$0xff]  ;;  %v991_v6 = vld [vmem:[%s3173_s5 + $0x48] sm:$0xff]  ;;  %v990_v7 = vld [vmem:[%s3173_s5 + $0x40] sm:$0xff] }
  0x23   : > { %2157 = vmatpush3.msra.mxu0 %v426_v12  ;;  %2545 = vmatprep.subr.mxu1 %v426_v12  ;;  %v989_v8 = vld [vmem:[%s3173_s5 + $0x38] sm:$0xff]  ;;  %v988_v9 = vld [vmem:[%s3173_s5 + $0x30] sm:$0xff]  ;;  %v987_v10 = vld [vmem:[%s3173_s5 + $0x28] sm:$0xff] }
  0x24   : > { %2158 = vmatprep.subr.mxu0 %v425_v13  ;;  %2561 = vmatpush3.msra.mxu1 %v426_v12  ;;  %v986_v11 = vld [vmem:[%s3173_s5 + $0x20] sm:$0xff]  ;;  %v985_v12 = vld [vmem:[%s3173_s5 + $0x18] sm:$0xff] }
  0x25   : > { %2159 = vmatpush3.msra.mxu0 %v425_v13  ;;  %2546 = vmatprep.subr.mxu1 %v425_v13 }
  0x26   : > { %2160 = vmatprep.subr.mxu0 %v424_v14  ;;  %2562 = vmatpush3.msra.mxu1 %v425_v13  ;;  %v2830_v13 = vld [vmem:[%s3170_s2] ss:$0 sm:$0xff] }
  0x27   : > { %2161 = vmatpush3.msra.mxu0 %v424_v14  ;;  %2547 = vmatprep.subr.mxu1 %v424_v14 }
  0x28   : > { %2162 = vmatprep.subr.mxu0 %v423_v15  ;;  %2563 = vmatpush3.msra.mxu1 %v424_v14 }
  0x29   : > { %2163 = vmatpush3.msra.mxu0 %v423_v15  ;;  %2548 = vmatprep.subr.mxu1 %v423_v15 }
  0x2a   : > { %2164 = vmatprep.subr.mxu0 %v422_v16  ;;  %2564 = vmatpush3.msra.mxu1 %v423_v15 }
  0x2b   : > { %2165 = vmatpush3.msra.mxu0 %v422_v16  ;;  %2549 = vmatprep.subr.mxu1 %v422_v16 }
  0x2c   : > { %2167 = vmatmul.mubr.f32.vlgmr.msra.gmra.mxu0 %v391_v17  ;;  %2565 = vmatpush3.msra.mxu1 %v422_v16 }
  0x2d   : > { %2169 = vmatprep.mubr.f32.mxu0 %v392_v18  ;;  %2190 = vmatprep.mubr.f32.mxu1 %v406_v19 }
  0x2e   : > { %2191 = vmatmul.mubr.f32.vlgmr.msra.gmra.mxu1 %v407_v20  ;;  %2214 = vmatprep.subr.mxu1 %v717_v21 }
  0x2f   : > { %2193 = vmatprep.mubr.f32.mxu1 %v408_v22  ;;  %2215 = vmatpush3.msra.mxu1 %v717_v21 }
  0x30   : > { %2170 = vmatmul.mubr.f32.gmra.mxu0 %v393_v23  ;;  %2216 = vmatprep.subr.mxu1 %v716_v24 }
  0x31   : > { %2172 = vmatprep.mubr.f32.mxu0 %v394_v25  ;;  %2217 = vmatpush3.msra.mxu1 %v716_v24 }
  0x32   : > { %2194 = vmatmul.mubr.f32.gmra.mxu1 %v409_v26  ;;  %2218 = vmatprep.subr.mxu1 %v715_v27 }
  0x33   : > { %2196 = vmatprep.mubr.f32.mxu1 %v410_v28  ;;  %2219 = vmatpush3.msra.mxu1 %v715_v27 }
  0x34   : > { %2173 = vmatmul.mubr.f32.gmra.mxu0 %v395_v29  ;;  %2220 = vmatprep.subr.mxu1 %v714_v30 }
  0x35   : > { %2175 = vmatprep.mubr.f32.mxu0 %v396_v31  ;;  %2221 = vmatpush3.msra.mxu1 %v714_v30 }
  0x36   : > { %2197 = vmatmul.mubr.f32.gmra.mxu1 %v411_v32  ;;  %2222 = vmatprep.subr.mxu1 %v713_v33 }
  0x37   : > { %2199 = vmatprep.mubr.f32.mxu1 %v412_v34  ;;  %2223 = vmatpush3.msra.mxu1 %v713_v33 }
  0x38   : > { %2176 = vmatmul.mubr.f32.gmra.mxu0 %v397_v35  ;;  %2224 = vmatprep.subr.mxu1 %v712_v36 }
  0x39   : > { %2178 = vmatprep.mubr.f32.mxu0 %v398_v37  ;;  %2225 = vmatpush3.msra.mxu1 %v712_v36 }
  0x3a   : > { %2200 = vmatmul.mubr.f32.gmra.mxu1 %v413_v38  ;;  %2226 = vmatprep.subr.mxu1 %v711_v39 }
  0x3b   : > { %2202 = vmatprep.mubr.f32.mxu1 %v414_v40  ;;  %2227 = vmatpush3.msra.mxu1 %v711_v39 }
  0x3c   : > { %2179 = vmatmul.mubr.f32.gmra.mxu0 %v399_v41  ;;  %2228 = vmatprep.subr.mxu1 %v710_v42 }
  0x3d   : > { %2181 = vmatprep.mubr.f32.mxu0 %v400_v43  ;;  %2229 = vmatpush3.msra.mxu1 %v710_v42 }
  0x3e   : > { %2203 = vmatmul.mubr.f32.gmra.mxu1 %v415_v44  ;;  %2230 = vmatprep.subr.mxu1 %v709_v45 }
  0x3f   : > { %2205 = vmatprep.mubr.f32.mxu1 %v416_v46  ;;  %2231 = vmatpush3.msra.mxu1 %v709_v45 }
  0x40   : > { %2182 = vmatmul.mubr.f32.gmra.mxu0 %v401_v47  ;;  %2232 = vmatprep.subr.mxu1 %v708_v48 }
  0x41   : > { %2184 = vmatprep.mubr.f32.mxu0 %v402_v49  ;;  %2233 = vmatpush3.msra.mxu1 %v708_v48 }
  0x42   : > { %2206 = vmatmul.mubr.f32.gmra.mxu1 %v417_v50  ;;  %2234 = vmatprep.subr.mxu1 %v707_v51 }
  0x43   : > { %2208 = vmatprep.mubr.f32.mxu1 %v418_v52  ;;  %2235 = vmatpush3.msra.mxu1 %v707_v51 }
  0x44   : > { %2185 = vmatmul.mubr.f32.gmra.mxu0 %v403_v53  ;;  %2236 = vmatprep.subr.mxu1 %v706_v54 }
  0x45   : > { %2187 = vmatprep.mubr.f32.mxu0 %v404_v55  ;;  %2237 = vmatpush3.msra.mxu1 %v706_v54 }
  0x46   : > { %2209 = vmatmul.mubr.f32.gmra.mxu1 %v419_v56  ;;  %2238 = vmatprep.subr.mxu1 %v705_v57 }
  0x47   : > { %2211 = vmatprep.mubr.f32.mxu1 %v420_v58  ;;  %2239 = vmatpush3.msra.mxu1 %v705_v57 }
  0x48   : > { %2188 = vmatmul.mubr.f32.gmra.mxu0 %v405_v59  ;;  %2240 = vmatprep.subr.mxu1 %v704_v61 }
  0x49   : > { %2241 = vmatpush3.msra.mxu1 %v704_v61  ;;  %2294 = vmatprep.subr.mxu0 %v997_v0 }
  0x4a   : > { %2212 = vmatmul.mubr.f32.gmra.mxu1 %v421_v60  ;;  %2242 = vmatprep.subr.mxu1 %v703_v62 }
  0x4b   : > { %2243 = vmatpush3.msra.mxu1 %v703_v62  ;;  %2295 = vmatpush3.msra.mxu0 %v997_v0 }
  0x4c   : > { %2244 = vmatprep.subr.mxu1 %v702_v63  ;;  %2296 = vmatprep.subr.mxu0 %v996_v1 }
  0x4d   : > { %2245 = vmatpush3.msra.mxu1 %v702_v63  ;;  %2297 = vmatpush3.msra.mxu0 %v996_v1 }
  0x4e   : > { %2298 = vmatprep.subr.mxu0 %v995_v2 }
  0x4f   : > { %2299 = vmatpush3.msra.mxu0 %v995_v2 }
  0x50   : > { %2300 = vmatprep.subr.mxu0 %v994_v3 }
  0x51   : > { %2301 = vmatpush3.msra.mxu0 %v994_v3 }
  0x52   : > { %2302 = vmatprep.subr.mxu0 %v993_v4 }
  0x53   : > { %2303 = vmatpush3.msra.mxu0 %v993_v4 }
  0x54   : > { %2304 = vmatprep.subr.mxu0 %v992_v5 }
  0x55   : > { %2305 = vmatpush3.msra.mxu0 %v992_v5 }
  0x56   : > { %2306 = vmatprep.subr.mxu0 %v991_v6 }
  0x57   : > { %2307 = vmatpush3.msra.mxu0 %v991_v6 }
  0x58   : > { %2308 = vmatprep.subr.mxu0 %v990_v7 }
  0x59   : > { %2309 = vmatpush3.msra.mxu0 %v990_v7 }
  0x5a   : > { %2310 = vmatprep.subr.mxu0 %v989_v8 }
  0x5b   : > { %2311 = vmatpush3.msra.mxu0 %v989_v8 }
  0x5c   : > { %2312 = vmatprep.subr.mxu0 %v988_v9 }
  0x5d   : > { %2313 = vmatpush3.msra.mxu0 %v988_v9 }
  0x5e   : > { %2314 = vmatprep.subr.mxu0 %v987_v10 }
  0x5f   : > { %2315 = vmatpush3.msra.mxu0 %v987_v10 }
  0x60   : > { %2316 = vmatprep.subr.mxu0 %v986_v11 }
  0x61   : > { %2317 = vmatpush3.msra.mxu0 %v986_v11 }
  0x62   : > { %2318 = vmatprep.subr.mxu0 %v985_v12 }
  0x63   : > { %2319 = vmatpush3.msra.mxu0 %v985_v12 }
  0xec   : > { %v2168_v14 = vpop.f32.mrf.mxu0 }
  0xed   : > { %v517_v15 = vadd.f32 %v2168_v14, %v2830_v13 }
  0xee   : > { %v511_v16 = vpop.f32.mrf.mxu0  ;;  %v2833_v17 = vpop.f32.mrf.mxu1 }
  0xef   : > { %v512_v18 = vadd.f32 %v2830_v13, %v511_v16  ;;  %v671_v22 = vmax.f32 %v517_v15, 0.0  ;;  %v597_v11 = vadd.f32 %v2833_v17, %v2830_v13 }
  0xf0   : > { %v2171_v19 = vpop.f32.mrf.mxu0  ;;  %v591_v20 = vpop.f32.mrf.mxu1 }
  0xf1   : > { %v670_v21 = vmax.f32 %v512_v18, 0.0  ;;  %v527_v23 = vadd.f32 %v2171_v19, %v2830_v13  ;;  %v592_v1 = vadd.f32 %v2830_v13, %v591_v20  ;;  %v687_v16 = vmax.f32 %v597_v11, 0.0 }
  0xf2   : > { %v521_v24 = vpop.f32.mrf.mxu0  ;;  %v2837_v25 = vpop.f32.mrf.mxu1 }
  0xf3   : > { %v522_v26 = vadd.f32 %v2830_v13, %v521_v24  ;;  %2246 = vmatprep.mubr.f32.mxu1 %v670_v21  ;;  %v673_v30 = vmax.f32 %v527_v23, 0.0  ;;  %v686_v8 = vmax.f32 %v592_v1, 0.0  ;;  %v607_v18 = vadd.f32 %v2837_v25, %v2830_v13 }
  0xf4   : > { %v2174_v27 = vpop.f32.mrf.mxu0  ;;  %2247 = vmatmul.mubr.f32.vlgmr.msra.gmra.mxu1 %v671_v22  ;;  %v601_v28 = vpop.f32.mrf.mxu1 }
  0xf5   : > { %v672_v29 = vmax.f32 %v522_v26, 0.0  ;;  %v537_v31 = vadd.f32 %v2174_v27, %v2830_v13  ;;  %v602_v9 = vadd.f32 %v2830_v13, %v601_v28  ;;  %v689_v22 = vmax.f32 %v607_v18, 0.0 }
  0xf6   : > { %v531_v32 = vpop.f32.mrf.mxu0  ;;  %v2841_v33 = vpop.f32.mrf.mxu1 }
  0xf7   : > { %v532_v34 = vadd.f32 %v2830_v13, %v531_v32  ;;  %2249 = vmatprep.mubr.f32.mxu1 %v672_v29  ;;  %v675_v37 = vmax.f32 %v537_v31, 0.0  ;;  %v688_v14 = vmax.f32 %v602_v9, 0.0  ;;  %v617_v17 = vadd.f32 %v2841_v33, %v2830_v13 }
  0xf8   : > { %v2177_v35 = vpop.f32.mrf.mxu0  ;;  %2250 = vmatmul.mubr.f32.gmra.mxu1 %v673_v30  ;;  %v611_v40 = vpop.f32.mrf.mxu1 }
  0xf9   : > { %v674_v36 = vmax.f32 %v532_v34, 0.0  ;;  %v547_v38 = vadd.f32 %v2177_v35, %v2830_v13  ;;  %v612_v15 = vadd.f32 %v2830_v13, %v611_v40  ;;  %v691_v27 = vmax.f32 %v617_v17, 0.0 }
  0xfa   : > { %v541_v39 = vpop.f32.mrf.mxu0  ;;  %v2201_v47 = vpop.f32.mrf.mxu1 }
  0xfb   : > { %v542_v41 = vadd.f32 %v2830_v13, %v541_v39  ;;  %2252 = vmatprep.mubr.f32.mxu1 %v674_v36  ;;  %v677_v44 = vmax.f32 %v547_v38, 0.0  ;;  %v690_v20 = vmax.f32 %v612_v15, 0.0  ;;  %v627_v28 = vadd.f32 %v2201_v47, %v2830_v13  ;;  %v984_v47 = vld [vmem:[%s3173_s5 + $0x10] sm:$0xff] }
  0xfc   : > { %v2180_v42 = vpop.f32.mrf.mxu0  ;;  %2253 = vmatmul.mubr.f32.gmra.mxu1 %v675_v37  ;;  %v621_v54 = vpop.f32.mrf.mxu1  ;;  %2320 = vmatprep.subr.mxu0 %v984_v47 }
  0xfd   : > { %v676_v43 = vmax.f32 %v542_v41, 0.0  ;;  %v557_v45 = vadd.f32 %v2180_v42, %v2830_v13  ;;  %v622_v21 = vadd.f32 %v2830_v13, %v621_v54  ;;  %v693_v31 = vmax.f32 %v627_v28, 0.0  ;;  %2321 = vmatpush3.msra.mxu0 %v984_v47  ;;  %v1272_v54 = vld [vmem:[%s3175_s7 + $0x50] sm:$0xff] }
  0xfe   : > { %v551_v46 = vpop.f32.mrf.mxu0  ;;  %v2204_v61 = vpop.f32.mrf.mxu1 }
  0xff   : > { %v552_v48 = vadd.f32 %v2830_v13, %v551_v46  ;;  %2255 = vmatprep.mubr.f32.mxu1 %v676_v43  ;;  %v679_v51 = vmax.f32 %v557_v45, 0.0  ;;  %v692_v24 = vmax.f32 %v622_v21, 0.0  ;;  %v637_v32 = vadd.f32 %v2204_v61, %v2830_v13  ;;  %v1265_v61 = vld [vmem:[%s3175_s7 + $0x18] sm:$0xff] }
 0x100   : > { %v2183_v49 = vpop.f32.mrf.mxu0  ;;  %2256 = vmatmul.mubr.f32.gmra.mxu1 %v677_v44  ;;  %v631_v5 = vpop.f32.mrf.mxu1 }
 0x101   : > { %v678_v50 = vmax.f32 %v552_v48, 0.0  ;;  %v567_v52 = vadd.f32 %v2183_v49, %v2830_v13  ;;  %v632_v26 = vadd.f32 %v2830_v13, %v631_v5  ;;  %v695_v36 = vmax.f32 %v637_v32, 0.0  ;;  %v983_v48 = vld [vmem:[%s3173_s5 + $0x8] sm:$0xff]  ;;  %v1277_v49 = vld [vmem:[%s3175_s7 + $0x78] sm:$0xff] }
 0x102   : > { %v561_v53 = vpop.f32.mrf.mxu0  ;;  %v2207_v12 = vpop.f32.mrf.mxu1  ;;  %2322 = vmatprep.subr.mxu0 %v983_v48  ;;  %2374 = vmatprep.subr.mxu1 %v1277_v49 }
 0x103   : > { %v562_v55 = vadd.f32 %v2830_v13, %v561_v53  ;;  %2258 = vmatprep.mubr.f32.mxu1 %v678_v50  ;;  %v681_v58 = vmax.f32 %v567_v52, 0.0  ;;  %v694_v29 = vmax.f32 %v632_v26, 0.0  ;;  %v647_v37 = vadd.f32 %v2207_v12, %v2830_v13  ;;  %2323 = vmatpush3.msra.mxu0 %v983_v48  ;;  %v1276_v50 = vld [vmem:[%s3175_s7 + $0x70] sm:$0xff]  ;;  %v1274_v52 = vld [vmem:[%s3175_s7 + $0x60] sm:$0xff]  ;;  %v1273_v53 = vld [vmem:[%s3175_s7 + $0x58] sm:$0xff] }
 0x104   : > { %v2186_v56 = vpop.f32.mrf.mxu0  ;;  %2259 = vmatmul.mubr.f32.gmra.mxu1 %v679_v51  ;;  %v641_v19 = vpop.f32.mrf.mxu1  ;;  %v1275_v51 = vld [vmem:[%s3175_s7 + $0x68] sm:$0xff] }
 0x105   : > { %v680_v57 = vmax.f32 %v562_v55, 0.0  ;;  %v577_v59 = vadd.f32 %v2186_v56, %v2830_v13  ;;  %v642_v30 = vadd.f32 %v2830_v13, %v641_v19  ;;  %v697_v41 = vmax.f32 %v647_v37, 0.0  ;;  %2375 = vmatpush3.msra.mxu1 %v1277_v49  ;;  %v1271_v55 = vld [vmem:[%s3175_s7 + $0x48] sm:$0xff]  ;;  %v1270_v56 = vld [vmem:[%s3175_s7 + $0x40] sm:$0xff] }
 0x106   : > { %v571_v60 = vpop.f32.mrf.mxu0  ;;  %v2210_v23 = vpop.f32.mrf.mxu1  ;;  %2376 = vmatprep.subr.mxu1 %v1276_v50 }
 0x107   : > { %v572_v62 = vadd.f32 %v2830_v13, %v571_v60  ;;  %2261 = vmatprep.mubr.f32.mxu1 %v680_v57  ;;  %v683_v2 = vmax.f32 %v577_v59, 0.0  ;;  %v696_v33 = vmax.f32 %v642_v30, 0.0  ;;  %v657_v42 = vadd.f32 %v2210_v23, %v2830_v13  ;;  %2377 = vmatpush3.msra.mxu1 %v1276_v50  ;;  %v1269_v57 = vld [vmem:[%s3175_s7 + $0x38] sm:$0xff]  ;;  %v1267_v59 = vld [vmem:[%s3175_s7 + $0x28] sm:$0xff]  ;;  %v1266_v60 = vld [vmem:[%s3175_s7 + $0x20] sm:$0xff] }
 0x108   : > { %v2189_v63 = vpop.f32.mrf.mxu0  ;;  %2262 = vmatmul.mubr.f32.gmra.mxu1 %v681_v58  ;;  %v651_v25 = vpop.f32.mrf.mxu1  ;;  %2378 = vmatprep.subr.mxu1 %v1275_v51  ;;  %v1268_v58 = vld [vmem:[%s3175_s7 + $0x30] sm:$0xff] }
 0x109   : > { %v682_v0 = vmax.f32 %v572_v62, 0.0  ;;  %v587_v3 = vadd.f32 %v2189_v63, %v2830_v13  ;;  %v652_v35 = vadd.f32 %v2830_v13, %v651_v25  ;;  %v699_v44 = vmax.f32 %v657_v42, 0.0  ;;  %2379 = vmatpush3.msra.mxu1 %v1275_v51  ;;  %v1264_v62 = vld [vmem:[%s3175_s7 + $0x10] sm:$0xff]  ;;  %v1263_v63 = vld [vmem:[%s3175_s7 + $0x8] sm:$0xff] }
 0x10a   : > { %v581_v4 = vpop.f32.mrf.mxu0  ;;  %v2213_v34 = vpop.f32.mrf.mxu1  ;;  %2380 = vmatprep.subr.mxu1 %v1274_v52 }
 0x10b   : > { %v582_v6 = vadd.f32 %v2830_v13, %v581_v4  ;;  %2264 = vmatprep.mubr.f32.mxu1 %v682_v0  ;;  %v685_v10 = vmax.f32 %v587_v3, 0.0  ;;  %v698_v39 = vmax.f32 %v652_v35, 0.0  ;;  %v667_v45 = vadd.f32 %v2213_v34, %v2830_v13  ;;  %2381 = vmatpush3.msra.mxu1 %v1274_v52  ;;  %v2930_v0 = vld [vmem:[%s3172_s4] ss:$0 sm:$0xff] }
 0x10c   : > { %2265 = vmatmul.mubr.f32.gmra.mxu1 %v683_v2  ;;  %v661_v38 = vpop.f32.mrf.mxu1  ;;  %2382 = vmatprep.subr.mxu1 %v1273_v53 }
 0x10d   : > { %v684_v7 = vmax.f32 %v582_v6, 0.0  ;;  %v662_v40 = vadd.f32 %v2830_v13, %v661_v38  ;;  %v701_v46 = vmax.f32 %v667_v45, 0.0  ;;  %v982_v13 = vld [vmem:[%s3173_s5] sm:$0xff]  ;;  %2383 = vmatpush3.msra.mxu1 %v1273_v53 }
 0x10e   : > { %2324 = vmatprep.subr.mxu0 %v982_v13  ;;  %2384 = vmatprep.subr.mxu1 %v1272_v54 }
 0x10f   : > { %2267 = vmatprep.mubr.f32.mxu1 %v684_v7  ;;  %v700_v43 = vmax.f32 %v662_v40, 0.0  ;;  %2325 = vmatpush3.msra.mxu0 %v982_v13 }
 0x110   : > { %2268 = vmatmul.mubr.f32.gmra.mxu1 %v685_v10 }
 0x111   : > { %2270 = vmatprep.mubr.f32.mxu1 %v686_v8  ;;  %2385 = vmatpush3.msra.mxu1 %v1272_v54 }
 0x112   : > { %2386 = vmatprep.subr.mxu1 %v1271_v55 }
 0x113   : > { %2387 = vmatpush3.msra.mxu1 %v1271_v55 }
 0x114   : > { %2271 = vmatmul.mubr.f32.gmra.mxu1 %v687_v16  ;;  %2388 = vmatprep.subr.mxu1 %v1270_v56 }
 0x115   : > { %2273 = vmatprep.mubr.f32.mxu1 %v688_v14  ;;  %2389 = vmatpush3.msra.mxu1 %v1270_v56 }
 0x116   : > { %2390 = vmatprep.subr.mxu1 %v1269_v57 }
 0x117   : > { %2391 = vmatpush3.msra.mxu1 %v1269_v57 }
 0x118   : > { %2274 = vmatmul.mubr.f32.gmra.mxu1 %v689_v22  ;;  %2392 = vmatprep.subr.mxu1 %v1268_v58 }
 0x119   : > { %2276 = vmatprep.mubr.f32.mxu1 %v690_v20  ;;  %2393 = vmatpush3.msra.mxu1 %v1268_v58 }
 0x11a   : > { %2394 = vmatprep.subr.mxu1 %v1267_v59 }
 0x11b   : > { %2395 = vmatpush3.msra.mxu1 %v1267_v59 }
 0x11c   : > { %2277 = vmatmul.mubr.f32.gmra.mxu1 %v691_v27  ;;  %2396 = vmatprep.subr.mxu1 %v1266_v60 }
 0x11d   : > { %2279 = vmatprep.mubr.f32.mxu1 %v692_v24  ;;  %2397 = vmatpush3.msra.mxu1 %v1266_v60 }
 0x11e   : > { %2398 = vmatprep.subr.mxu1 %v1265_v61 }
 0x11f   : > { %2399 = vmatpush3.msra.mxu1 %v1265_v61 }
 0x120   : > { %2280 = vmatmul.mubr.f32.gmra.mxu1 %v693_v31  ;;  %2400 = vmatprep.subr.mxu1 %v1264_v62 }
 0x121   : > { %2282 = vmatprep.mubr.f32.mxu1 %v694_v29  ;;  %2401 = vmatpush3.msra.mxu1 %v1264_v62 }
 0x122   : > { %2402 = vmatprep.subr.mxu1 %v1263_v63 }
 0x123   : > { %2403 = vmatpush3.msra.mxu1 %v1263_v63 }
 0x124   : > { %2283 = vmatmul.mubr.f32.gmra.mxu1 %v695_v36 }
 0x125   : > { %2285 = vmatprep.mubr.f32.mxu1 %v696_v33 }
 0x128   : > { %2286 = vmatmul.mubr.f32.gmra.mxu1 %v697_v41 }
 0x129   : > { %2288 = vmatprep.mubr.f32.mxu1 %v698_v39 }
 0x12c   : > { %2289 = vmatmul.mubr.f32.gmra.mxu1 %v699_v44 }
 0x12d   : > { %2291 = vmatprep.mubr.f32.mxu1 %v700_v43 }
 0x130   : > { %2292 = vmatmul.mubr.f32.gmra.mxu1 %v701_v46 }
 0x1b4   : > { %v2248_v1 = vpop.f32.mrf.mxu1 }
 0x1b5   : > { %v797_v2 = vadd.f32 %v2248_v1, %v2930_v0 }
 0x1b6   : > { %v791_v3 = vpop.f32.mrf.mxu1 }
 0x1b7   : > { %v792_v4 = vadd.f32 %v2930_v0, %v791_v3  ;;  %v951_v7 = vmax.f32 %v797_v2, 0.0 }
 0x1b8   : > { %v2251_v5 = vpop.f32.mrf.mxu1 }
 0x1b9   : > { %v950_v6 = vmax.f32 %v792_v4, 0.0  ;;  %v807_v8 = vadd.f32 %v2251_v5, %v2930_v0 }
 0x1ba   : > { %v801_v9 = vpop.f32.mrf.mxu1 }
 0x1bb   : > { %v802_v10 = vadd.f32 %v2930_v0, %v801_v9  ;;  %2326 = vmatprep.mubr.f32.mxu0 %v950_v6  ;;  %v953_v14 = vmax.f32 %v807_v8, 0.0 }
 0x1bc   : > { %v2254_v11 = vpop.f32.mrf.mxu1  ;;  %2327 = vmatmul.mubr.f32.vlgmr.msra.gmra.mxu0 %v951_v7 }
 0x1bd   : > { %v952_v12 = vmax.f32 %v802_v10, 0.0  ;;  %v817_v15 = vadd.f32 %v2254_v11, %v2930_v0 }
 0x1be   : > { %v811_v16 = vpop.f32.mrf.mxu1 }
 0x1bf   : > { %v812_v18 = vadd.f32 %v2930_v0, %v811_v16  ;;  %2329 = vmatprep.mubr.f32.mxu0 %v952_v12  ;;  %v955_v21 = vmax.f32 %v817_v15, 0.0 }
 0x1c0   : > { %v2257_v19 = vpop.f32.mrf.mxu1  ;;  %2330 = vmatmul.mubr.f32.gmra.mxu0 %v953_v14 }
 0x1c1   : > { %v954_v20 = vmax.f32 %v812_v18, 0.0  ;;  %v827_v22 = vadd.f32 %v2257_v19, %v2930_v0 }
 0x1c2   : > { %v821_v17 = vpop.f32.mrf.mxu1 }
 0x1c3   : > { %v822_v23 = vadd.f32 %v2930_v0, %v821_v17  ;;  %2332 = vmatprep.mubr.f32.mxu0 %v954_v20  ;;  %v957_v27 = vmax.f32 %v827_v22, 0.0 }
 0x1c4   : > { %v2260_v24 = vpop.f32.mrf.mxu1  ;;  %2333 = vmatmul.mubr.f32.gmra.mxu0 %v955_v21 }
 0x1c5   : > { %v956_v26 = vmax.f32 %v822_v23, 0.0  ;;  %v837_v28 = vadd.f32 %v2260_v24, %v2930_v0 }
 0x1c6   : > { %v831_v25 = vpop.f32.mrf.mxu1 }
 0x1c7   : > { %v832_v29 = vadd.f32 %v2930_v0, %v831_v25  ;;  %2335 = vmatprep.mubr.f32.mxu0 %v956_v26  ;;  %v959_v32 = vmax.f32 %v837_v28, 0.0 }
 0x1c8   : > { %v2263_v30 = vpop.f32.mrf.mxu1  ;;  %2336 = vmatmul.mubr.f32.gmra.mxu0 %v957_v27 }
 0x1c9   : > { %v958_v31 = vmax.f32 %v832_v29, 0.0  ;;  %v847_v34 = vadd.f32 %v2263_v30, %v2930_v0 }
 0x1ca   : > { %v841_v33 = vpop.f32.mrf.mxu1 }
 0x1cb   : > { %v842_v35 = vadd.f32 %v2930_v0, %v841_v33  ;;  %2338 = vmatprep.mubr.f32.mxu0 %v958_v31  ;;  %v961_v38 = vmax.f32 %v847_v34, 0.0 }
 0x1cc   : > { %v2266_v36 = vpop.f32.mrf.mxu1  ;;  %2339 = vmatmul.mubr.f32.gmra.mxu0 %v959_v32 }
 0x1cd   : > { %v960_v37 = vmax.f32 %v842_v35, 0.0  ;;  %v857_v39 = vadd.f32 %v2266_v36, %v2930_v0  ;;  %v1262_v35 = vld [vmem:[%s3175_s7] sm:$0xff]  ;;  %v1557_v36 = vld [vmem:[%s3177_s9 + $0x78] sm:$0xff] }
 0x1ce   : > { %v851_v40 = vpop.f32.mrf.mxu1  ;;  %2404 = vmatprep.subr.mxu1 %v1262_v35  ;;  %2454 = vmatprep.subr.mxu0 %v1557_v36 }
 0x1cf   : > { %v852_v41 = vadd.f32 %v2930_v0, %v851_v40  ;;  %2341 = vmatprep.mubr.f32.mxu0 %v960_v37  ;;  %v963_v44 = vmax.f32 %v857_v39, 0.0  ;;  %2405 = vmatpush3.msra.mxu1 %v1262_v35  ;;  %v1555_v37 = vld [vmem:[%s3177_s9 + $0x68] sm:$0xff]  ;;  %v1553_v39 = vld [vmem:[%s3177_s9 + $0x58] sm:$0xff]  ;;  %v1552_v40 = vld [vmem:[%s3177_s9 + $0x50] sm:$0xff] }
 0x1d0   : > { %v2269_v42 = vpop.f32.mrf.mxu1  ;;  %2342 = vmatmul.mubr.f32.gmra.mxu0 %v961_v38  ;;  %v1554_v38 = vld [vmem:[%s3177_s9 + $0x60] sm:$0xff] }
 0x1d1   : > { %v962_v43 = vmax.f32 %v852_v41, 0.0  ;;  %v867_v45 = vadd.f32 %v2269_v42, %v2930_v0  ;;  %2455 = vmatpush3.msra.mxu0 %v1557_v36  ;;  %v1551_v41 = vld [vmem:[%s3177_s9 + $0x48] sm:$0xff]  ;;  %v1550_v42 = vld [vmem:[%s3177_s9 + $0x40] sm:$0xff] }
 0x1d2   : > { %v861_v46 = vpop.f32.mrf.mxu1 }
 0x1d3   : > { %v862_v47 = vadd.f32 %v2930_v0, %v861_v46  ;;  %2344 = vmatprep.mubr.f32.mxu0 %v962_v43  ;;  %v965_v49 = vmax.f32 %v867_v45, 0.0  ;;  %v1549_v43 = vld [vmem:[%s3177_s9 + $0x38] sm:$0xff]  ;;  %v1547_v45 = vld [vmem:[%s3177_s9 + $0x28] sm:$0xff]  ;;  %v1546_v46 = vld [vmem:[%s3177_s9 + $0x20] sm:$0xff] }
 0x1d4   : > { %v2272_v48 = vpop.f32.mrf.mxu1  ;;  %2345 = vmatmul.mubr.f32.gmra.mxu0 %v963_v44  ;;  %v1548_v44 = vld [vmem:[%s3177_s9 + $0x30] sm:$0xff] }
 0x1d5   : > { %v964_v13 = vmax.f32 %v862_v47, 0.0  ;;  %v877_v50 = vadd.f32 %v2272_v48, %v2930_v0  ;;  %v1545_v47 = vld [vmem:[%s3177_s9 + $0x18] sm:$0xff]  ;;  %v1544_v48 = vld [vmem:[%s3177_s9 + $0x10] sm:$0xff] }
 0x1d6   : > { %v871_v51 = vpop.f32.mrf.mxu1 }
 0x1d7   : > { %v872_v52 = vadd.f32 %v2930_v0, %v871_v51  ;;  %2347 = vmatprep.mubr.f32.mxu0 %v964_v13  ;;  %v967_v55 = vmax.f32 %v877_v50, 0.0  ;;  %v1543_v13 = vld [vmem:[%s3177_s9 + $0x8] sm:$0xff] }
 0x1d8   : > { %v2275_v53 = vpop.f32.mrf.mxu1  ;;  %2348 = vmatmul.mubr.f32.gmra.mxu0 %v965_v49  ;;  %v3015_v49 = vld [vmem:[%s3174_s6] ss:$0 sm:$0xff] }
 0x1d9   : > { %v966_v54 = vmax.f32 %v872_v52, 0.0  ;;  %v887_v56 = vadd.f32 %v2275_v53, %v2930_v0 }
 0x1da   : > { %v881_v57 = vpop.f32.mrf.mxu1 }
 0x1db   : > { %v882_v58 = vadd.f32 %v2930_v0, %v881_v57  ;;  %2350 = vmatprep.mubr.f32.mxu0 %v966_v54  ;;  %v969_v61 = vmax.f32 %v887_v56, 0.0 }
 0x1dc   : > { %v2278_v59 = vpop.f32.mrf.mxu1  ;;  %2351 = vmatmul.mubr.f32.gmra.mxu0 %v967_v55 }
 0x1dd   : > { %v968_v60 = vmax.f32 %v882_v58, 0.0  ;;  %v897_v62 = vadd.f32 %v2278_v59, %v2930_v0 }
 0x1de   : > { %v891_v63 = vpop.f32.mrf.mxu1 }
 0x1df   : > { %v892_v1 = vadd.f32 %v2930_v0, %v891_v63  ;;  %2353 = vmatprep.mubr.f32.mxu0 %v968_v60  ;;  %v971_v4 = vmax.f32 %v897_v62, 0.0 }
 0x1e0   : > { %v2281_v2 = vpop.f32.mrf.mxu1  ;;  %2354 = vmatmul.mubr.f32.gmra.mxu0 %v969_v61 }
 0x1e1   : > { %v970_v3 = vmax.f32 %v892_v1, 0.0  ;;  %v907_v5 = vadd.f32 %v2281_v2, %v2930_v0 }
 0x1e2   : > { %v901_v6 = vpop.f32.mrf.mxu1 }
 0x1e3   : > { %v902_v7 = vadd.f32 %v2930_v0, %v901_v6  ;;  %2356 = vmatprep.mubr.f32.mxu0 %v970_v3  ;;  %v973_v10 = vmax.f32 %v907_v5, 0.0 }
 0x1e4   : > { %v2284_v8 = vpop.f32.mrf.mxu1  ;;  %2357 = vmatmul.mubr.f32.gmra.mxu0 %v971_v4 }
 0x1e5   : > { %v972_v9 = vmax.f32 %v902_v7, 0.0  ;;  %v917_v11 = vadd.f32 %v2284_v8, %v2930_v0 }
 0x1e6   : > { %v911_v12 = vpop.f32.mrf.mxu1 }
 0x1e7   : > { %v912_v14 = vadd.f32 %v2930_v0, %v911_v12  ;;  %2359 = vmatprep.mubr.f32.mxu0 %v972_v9  ;;  %v975_v18 = vmax.f32 %v917_v11, 0.0 }
 0x1e8   : > { %v2287_v15 = vpop.f32.mrf.mxu1  ;;  %2360 = vmatmul.mubr.f32.gmra.mxu0 %v973_v10 }
 0x1e9   : > { %v974_v16 = vmax.f32 %v912_v14, 0.0  ;;  %v927_v19 = vadd.f32 %v2287_v15, %v2930_v0 }
 0x1ea   : > { %v921_v20 = vpop.f32.mrf.mxu1 }
 0x1eb   : > { %v922_v21 = vadd.f32 %v2930_v0, %v921_v20  ;;  %2362 = vmatprep.mubr.f32.mxu0 %v974_v16  ;;  %v977_v23 = vmax.f32 %v927_v19, 0.0 }
 0x1ec   : > { %v2290_v22 = vpop.f32.mrf.mxu1  ;;  %2363 = vmatmul.mubr.f32.gmra.mxu0 %v975_v18 }
 0x1ed   : > { %v976_v17 = vmax.f32 %v922_v21, 0.0  ;;  %v937_v24 = vadd.f32 %v2290_v22, %v2930_v0 }
 0x1ee   : > { %v931_v26 = vpop.f32.mrf.mxu1 }
 0x1ef   : > { %v932_v27 = vadd.f32 %v2930_v0, %v931_v26  ;;  %2365 = vmatprep.mubr.f32.mxu0 %v976_v17  ;;  %v979_v29 = vmax.f32 %v937_v24, 0.0 }
 0x1f0   : > { %v2293_v28 = vpop.f32.mrf.mxu1  ;;  %2366 = vmatmul.mubr.f32.gmra.mxu0 %v977_v23 }
 0x1f1   : > { %v978_v25 = vmax.f32 %v932_v27, 0.0  ;;  %v947_v30 = vadd.f32 %v2293_v28, %v2930_v0 }
 0x1f2   : > { %v941_v31 = vpop.f32.mrf.mxu1 }
 0x1f3   : > { %v942_v32 = vadd.f32 %v2930_v0, %v941_v31  ;;  %2368 = vmatprep.mubr.f32.mxu0 %v978_v25  ;;  %v981_v33 = vmax.f32 %v947_v30, 0.0  ;;  %v1556_v0 = vld [vmem:[%s3177_s9 + $0x70] sm:$0xff] }
 0x1f4   : > { %2369 = vmatmul.mubr.f32.gmra.mxu0 %v979_v29  ;;  %2456 = vmatprep.subr.mxu0 %v1556_v0 }
 0x1f5   : > { %v980_v34 = vmax.f32 %v942_v32, 0.0  ;;  %2457 = vmatpush3.msra.mxu0 %v1556_v0 }
 0x1f6   : > { %2458 = vmatprep.subr.mxu0 %v1555_v37 }
 0x1f7   : > { %2371 = vmatprep.mubr.f32.mxu0 %v980_v34  ;;  %2459 = vmatpush3.msra.mxu0 %v1555_v37 }
 0x1f8   : > { %2372 = vmatmul.mubr.f32.gmra.mxu0 %v981_v33  ;;  %2460 = vmatprep.subr.mxu0 %v1554_v38 }
 0x1f9   : > { %2461 = vmatpush3.msra.mxu0 %v1554_v38 }
 0x1fa   : > { %2462 = vmatprep.subr.mxu0 %v1553_v39 }
 0x1fb   : > { %2463 = vmatpush3.msra.mxu0 %v1553_v39 }
 0x1fc   : > { %2464 = vmatprep.subr.mxu0 %v1552_v40 }
 0x1fd   : > { %2465 = vmatpush3.msra.mxu0 %v1552_v40 }
 0x1fe   : > { %2466 = vmatprep.subr.mxu0 %v1551_v41 }
 0x1ff   : > { %2467 = vmatpush3.msra.mxu0 %v1551_v41 }
 0x200   : > { %2468 = vmatprep.subr.mxu0 %v1550_v42 }
 0x201   : > { %2469 = vmatpush3.msra.mxu0 %v1550_v42 }
 0x202   : > { %2470 = vmatprep.subr.mxu0 %v1549_v43 }
 0x203   : > { %2471 = vmatpush3.msra.mxu0 %v1549_v43 }
 0x204   : > { %2472 = vmatprep.subr.mxu0 %v1548_v44 }
 0x205   : > { %2473 = vmatpush3.msra.mxu0 %v1548_v44 }
 0x206   : > { %2474 = vmatprep.subr.mxu0 %v1547_v45 }
 0x207   : > { %2475 = vmatpush3.msra.mxu0 %v1547_v45 }
 0x208   : > { %2476 = vmatprep.subr.mxu0 %v1546_v46 }
 0x209   : > { %2477 = vmatpush3.msra.mxu0 %v1546_v46 }
 0x20a   : > { %2478 = vmatprep.subr.mxu0 %v1545_v47 }
 0x20b   : > { %2479 = vmatpush3.msra.mxu0 %v1545_v47 }
 0x20c   : > { %2480 = vmatprep.subr.mxu0 %v1544_v48 }
 0x20d   : > { %2481 = vmatpush3.msra.mxu0 %v1544_v48 }
 0x20e   : > { %2482 = vmatprep.subr.mxu0 %v1543_v13 }
 0x20f   : > { %2483 = vmatpush3.msra.mxu0 %v1543_v13 }
 0x27c   : > { %v2328_v50 = vpop.f32.mrf.mxu0 }
 0x27d   : > { %v1077_v51 = vadd.f32 %v2328_v50, %v3015_v49 }
 0x27e   : > { %v1071_v52 = vpop.f32.mrf.mxu0 }
 0x27f   : > { %v1072_v53 = vadd.f32 %v3015_v49, %v1071_v52  ;;  %v1231_v56 = vmax.f32 %v1077_v51, 0.0 }
 0x280   : > { %v2331_v54 = vpop.f32.mrf.mxu0 }
 0x281   : > { %v1230_v55 = vmax.f32 %v1072_v53, 0.0  ;;  %v1087_v57 = vadd.f32 %v2331_v54, %v3015_v49 }
 0x282   : > { %v1081_v58 = vpop.f32.mrf.mxu0 }
 0x283   : > { %v1082_v59 = vadd.f32 %v3015_v49, %v1081_v58  ;;  %2406 = vmatprep.mubr.f32.mxu1 %v1230_v55  ;;  %v1233_v62 = vmax.f32 %v1087_v57, 0.0 }
 0x284   : > { %v2334_v60 = vpop.f32.mrf.mxu0  ;;  %2407 = vmatmul.mubr.f32.vlgmr.msra.gmra.mxu1 %v1231_v56 }
 0x285   : > { %v1232_v61 = vmax.f32 %v1082_v59, 0.0  ;;  %v1097_v63 = vadd.f32 %v2334_v60, %v3015_v49 }
 0x286   : > { %v1091_v1 = vpop.f32.mrf.mxu0 }
 0x287   : > { %v1092_v2 = vadd.f32 %v3015_v49, %v1091_v1  ;;  %2409 = vmatprep.mubr.f32.mxu1 %v1232_v61  ;;  %v1235_v5 = vmax.f32 %v1097_v63, 0.0 }
 0x288   : > { %v2337_v3 = vpop.f32.mrf.mxu0  ;;  %2410 = vmatmul.mubr.f32.gmra.mxu1 %v1233_v62 }
 0x289   : > { %v1234_v4 = vmax.f32 %v1092_v2, 0.0  ;;  %v1107_v6 = vadd.f32 %v2337_v3, %v3015_v49 }
 0x28a   : > { %v1101_v7 = vpop.f32.mrf.mxu0 }
 0x28b   : > { %v1102_v8 = vadd.f32 %v3015_v49, %v1101_v7  ;;  %2412 = vmatprep.mubr.f32.mxu1 %v1234_v4  ;;  %v1237_v11 = vmax.f32 %v1107_v6, 0.0 }
 0x28c   : > { %v2340_v9 = vpop.f32.mrf.mxu0  ;;  %2413 = vmatmul.mubr.f32.gmra.mxu1 %v1235_v5 }
 0x28d   : > { %v1236_v10 = vmax.f32 %v1102_v8, 0.0  ;;  %v1117_v12 = vadd.f32 %v2340_v9, %v3015_v49 }
 0x28e   : > { %v1111_v14 = vpop.f32.mrf.mxu0 }
 0x28f   : > { %v1112_v15 = vadd.f32 %v3015_v49, %v1111_v14  ;;  %2415 = vmatprep.mubr.f32.mxu1 %v1236_v10  ;;  %v1239_v19 = vmax.f32 %v1117_v12, 0.0 }
 0x290   : > { %v2343_v16 = vpop.f32.mrf.mxu0  ;;  %2416 = vmatmul.mubr.f32.gmra.mxu1 %v1237_v11 }
 0x291   : > { %v1238_v18 = vmax.f32 %v1112_v15, 0.0  ;;  %v1127_v20 = vadd.f32 %v2343_v16, %v3015_v49 }
 0x292   : > { %v1121_v21 = vpop.f32.mrf.mxu0 }
 0x293   : > { %v1122_v22 = vadd.f32 %v3015_v49, %v1121_v21  ;;  %2418 = vmatprep.mubr.f32.mxu1 %v1238_v18  ;;  %v1241_v24 = vmax.f32 %v1127_v20, 0.0 }
 0x294   : > { %v2346_v17 = vpop.f32.mrf.mxu0  ;;  %2419 = vmatmul.mubr.f32.gmra.mxu1 %v1239_v19 }
 0x295   : > { %v1240_v23 = vmax.f32 %v1122_v22, 0.0  ;;  %v1137_v26 = vadd.f32 %v2346_v17, %v3015_v49  ;;  %v1542_v22 = vld [vmem:[%s3177_s9] sm:$0xff] }
 0x296   : > { %v1131_v27 = vpop.f32.mrf.mxu0  ;;  %2484 = vmatprep.subr.mxu0 %v1542_v22  ;;  %v3055_v17 = vld [vmem:[%s3176_s8] ss:$0 sm:$0xff] }
 0x297   : > { %v1132_v28 = vadd.f32 %v3015_v49, %v1131_v27  ;;  %2421 = vmatprep.mubr.f32.mxu1 %v1240_v23  ;;  %v1243_v30 = vmax.f32 %v1137_v26, 0.0  ;;  %2485 = vmatpush3.msra.mxu0 %v1542_v22 }
 0x298   : > { %v2349_v25 = vpop.f32.mrf.mxu0  ;;  %2422 = vmatmul.mubr.f32.gmra.mxu1 %v1241_v24 }
 0x299   : > { %v1242_v29 = vmax.f32 %v1132_v28, 0.0  ;;  %v1147_v31 = vadd.f32 %v2349_v25, %v3015_v49 }
 0x29a   : > { %v1141_v32 = vpop.f32.mrf.mxu0 }
 0x29b   : > { %v1142_v34 = vadd.f32 %v3015_v49, %v1141_v32  ;;  %2424 = vmatprep.mubr.f32.mxu1 %v1242_v29  ;;  %v1245_v36 = vmax.f32 %v1147_v31, 0.0 }
 0x29c   : > { %v2352_v33 = vpop.f32.mrf.mxu0  ;;  %2425 = vmatmul.mubr.f32.gmra.mxu1 %v1243_v30 }
 0x29d   : > { %v1244_v35 = vmax.f32 %v1142_v34, 0.0  ;;  %v1157_v0 = vadd.f32 %v2352_v33, %v3015_v49 }
 0x29e   : > { %v1151_v37 = vpop.f32.mrf.mxu0 }
 0x29f   : > { %v1152_v38 = vadd.f32 %v3015_v49, %v1151_v37  ;;  %2427 = vmatprep.mubr.f32.mxu1 %v1244_v35  ;;  %v1247_v41 = vmax.f32 %v1157_v0, 0.0 }
 0x2a0   : > { %v2355_v39 = vpop.f32.mrf.mxu0  ;;  %2428 = vmatmul.mubr.f32.gmra.mxu1 %v1245_v36 }
 0x2a1   : > { %v1246_v40 = vmax.f32 %v1152_v38, 0.0  ;;  %v1167_v42 = vadd.f32 %v2355_v39, %v3015_v49 }
 0x2a2   : > { %v1161_v43 = vpop.f32.mrf.mxu0 }
 0x2a3   : > { %v1162_v44 = vadd.f32 %v3015_v49, %v1161_v43  ;;  %2430 = vmatprep.mubr.f32.mxu1 %v1246_v40  ;;  %v1249_v47 = vmax.f32 %v1167_v42, 0.0 }
 0x2a4   : > { %v2358_v45 = vpop.f32.mrf.mxu0  ;;  %2431 = vmatmul.mubr.f32.gmra.mxu1 %v1247_v41 }
 0x2a5   : > { %v1248_v46 = vmax.f32 %v1162_v44, 0.0  ;;  %v1177_v48 = vadd.f32 %v2358_v45, %v3015_v49 }
 0x2a6   : > { %v1171_v13 = vpop.f32.mrf.mxu0 }
 0x2a7   : > { %v1172_v50 = vadd.f32 %v3015_v49, %v1171_v13  ;;  %2433 = vmatprep.mubr.f32.mxu1 %v1248_v46  ;;  %v1251_v53 = vmax.f32 %v1177_v48, 0.0 }
 0x2a8   : > { %v2361_v51 = vpop.f32.mrf.mxu0  ;;  %2434 = vmatmul.mubr.f32.gmra.mxu1 %v1249_v47 }
 0x2a9   : > { %v1250_v52 = vmax.f32 %v1172_v50, 0.0  ;;  %v1187_v54 = vadd.f32 %v2361_v51, %v3015_v49 }
 0x2aa   : > { %v1181_v55 = vpop.f32.mrf.mxu0 }
 0x2ab   : > { %v1182_v56 = vadd.f32 %v3015_v49, %v1181_v55  ;;  %2436 = vmatprep.mubr.f32.mxu1 %v1250_v52  ;;  %v1253_v59 = vmax.f32 %v1187_v54, 0.0 }
 0x2ac   : > { %v2364_v57 = vpop.f32.mrf.mxu0  ;;  %2437 = vmatmul.mubr.f32.gmra.mxu1 %v1251_v53 }
 0x2ad   : > { %v1252_v58 = vmax.f32 %v1182_v56, 0.0  ;;  %v1197_v60 = vadd.f32 %v2364_v57, %v3015_v49 }
 0x2ae   : > { %v1191_v61 = vpop.f32.mrf.mxu0 }
 0x2af   : > { %v1192_v62 = vadd.f32 %v3015_v49, %v1191_v61  ;;  %2439 = vmatprep.mubr.f32.mxu1 %v1252_v58  ;;  %v1255_v2 = vmax.f32 %v1197_v60, 0.0 }
 0x2b0   : > { %v2367_v63 = vpop.f32.mrf.mxu0  ;;  %2440 = vmatmul.mubr.f32.gmra.mxu1 %v1253_v59 }
 0x2b1   : > { %v1254_v1 = vmax.f32 %v1192_v62, 0.0  ;;  %v1207_v3 = vadd.f32 %v2367_v63, %v3015_v49 }
 0x2b2   : > { %v1201_v4 = vpop.f32.mrf.mxu0 }
 0x2b3   : > { %v1202_v5 = vadd.f32 %v3015_v49, %v1201_v4  ;;  %2442 = vmatprep.mubr.f32.mxu1 %v1254_v1  ;;  %v1257_v8 = vmax.f32 %v1207_v3, 0.0 }
 0x2b4   : > { %v2370_v6 = vpop.f32.mrf.mxu0  ;;  %2443 = vmatmul.mubr.f32.gmra.mxu1 %v1255_v2 }
 0x2b5   : > { %v1256_v7 = vmax.f32 %v1202_v5, 0.0  ;;  %v1217_v9 = vadd.f32 %v2370_v6, %v3015_v49 }
 0x2b6   : > { %v1211_v10 = vpop.f32.mrf.mxu0 }
 0x2b7   : > { %v1212_v11 = vadd.f32 %v3015_v49, %v1211_v10  ;;  %2445 = vmatprep.mubr.f32.mxu1 %v1256_v7  ;;  %v1259_v15 = vmax.f32 %v1217_v9, 0.0 }
 0x2b8   : > { %v2373_v12 = vpop.f32.mrf.mxu0  ;;  %2446 = vmatmul.mubr.f32.gmra.mxu1 %v1257_v8 }
 0x2b9   : > { %v1258_v14 = vmax.f32 %v1212_v11, 0.0  ;;  %v1227_v16 = vadd.f32 %v2373_v12, %v3015_v49 }
 0x2ba   : > { %v1221_v18 = vpop.f32.mrf.mxu0 }
 0x2bb   : > { %v1222_v19 = vadd.f32 %v3015_v49, %v1221_v18  ;;  %2448 = vmatprep.mubr.f32.mxu1 %v1258_v14  ;;  %v1261_v21 = vmax.f32 %v1227_v16, 0.0 }
 0x2bc   : > { %2449 = vmatmul.mubr.f32.gmra.mxu1 %v1259_v15 }
 0x2bd   : > { %v1260_v20 = vmax.f32 %v1222_v19, 0.0 }
 0x2bf   : > { %2451 = vmatprep.mubr.f32.mxu1 %v1260_v20 }
 0x2c0   : > { %2452 = vmatmul.mubr.f32.gmra.mxu1 %v1261_v21 }
 0x344   : > { %v2408_v23 = vpop.f32.mrf.mxu1 }
 0x345   : > { %v1357_v49 = vadd.f32 %v2408_v23, %v3055_v17 }
 0x346   : > { %v1351_v24 = vpop.f32.mrf.mxu1 }
 0x347   : > { %v1352_v26 = vadd.f32 %v3055_v17, %v1351_v24  ;;  %v1511_v25 = vmax.f32 %v1357_v49, 0.0 }
 0x348   : > { %v2411_v27 = vpop.f32.mrf.mxu1 }
 0x349   : > { %v1510_v28 = vmax.f32 %v1352_v26, 0.0  ;;  %v1367_v29 = vadd.f32 %v2411_v27, %v3055_v17 }
 0x34a   : > { %v1361_v30 = vpop.f32.mrf.mxu1 }
 0x34b   : > { %v1362_v31 = vadd.f32 %v3055_v17, %v1361_v30  ;;  %2486 = vmatprep.mubr.f32.mxu0 %v1510_v28  ;;  %v1513_v33 = vmax.f32 %v1367_v29, 0.0 }
 0x34c   : > { %v2414_v32 = vpop.f32.mrf.mxu1  ;;  %2487 = vmatmul.mubr.f32.vlgmr.msra.gmra.mxu0 %v1511_v25 }
 0x34d   : > { %v1512_v34 = vmax.f32 %v1362_v31, 0.0  ;;  %v1377_v35 = vadd.f32 %v2414_v32, %v3055_v17 }
 0x34e   : > { %v1371_v36 = vpop.f32.mrf.mxu1 }
 0x34f   : > { %v1372_v0 = vadd.f32 %v3055_v17, %v1371_v36  ;;  %2489 = vmatprep.mubr.f32.mxu0 %v1512_v34  ;;  %v1515_v39 = vmax.f32 %v1377_v35, 0.0 }
 0x350   : > { %v2417_v37 = vpop.f32.mrf.mxu1  ;;  %2490 = vmatmul.mubr.f32.gmra.mxu0 %v1513_v33 }
 0x351   : > { %v1514_v38 = vmax.f32 %v1372_v0, 0.0  ;;  %v1387_v40 = vadd.f32 %v2417_v37, %v3055_v17 }
 0x352   : > { %v1381_v41 = vpop.f32.mrf.mxu1 }
 0x353   : > { %v1382_v42 = vadd.f32 %v3055_v17, %v1381_v41  ;;  %2492 = vmatprep.mubr.f32.mxu0 %v1514_v38  ;;  %v1517_v45 = vmax.f32 %v1387_v40, 0.0 }
 0x354   : > { %v2420_v43 = vpop.f32.mrf.mxu1  ;;  %2493 = vmatmul.mubr.f32.gmra.mxu0 %v1515_v39 }
 0x355   : > { %v1516_v44 = vmax.f32 %v1382_v42, 0.0  ;;  %v1397_v46 = vadd.f32 %v2420_v43, %v3055_v17 }
 0x356   : > { %v1391_v47 = vpop.f32.mrf.mxu1 }
 0x357   : > { %v1392_v48 = vadd.f32 %v3055_v17, %v1391_v47  ;;  %2495 = vmatprep.mubr.f32.mxu0 %v1516_v44  ;;  %v1519_v51 = vmax.f32 %v1397_v46, 0.0 }
 0x358   : > { %v2423_v13 = vpop.f32.mrf.mxu1  ;;  %2496 = vmatmul.mubr.f32.gmra.mxu0 %v1517_v45 }
 0x359   : > { %v1518_v50 = vmax.f32 %v1392_v48, 0.0  ;;  %v1407_v52 = vadd.f32 %v2423_v13, %v3055_v17 }
 0x35a   : > { %v1401_v53 = vpop.f32.mrf.mxu1 }
 0x35b   : > { %v1402_v54 = vadd.f32 %v3055_v17, %v1401_v53  ;;  %2498 = vmatprep.mubr.f32.mxu0 %v1518_v50  ;;  %v1521_v57 = vmax.f32 %v1407_v52, 0.0 }
 0x35c   : > { %v2426_v55 = vpop.f32.mrf.mxu1  ;;  %2499 = vmatmul.mubr.f32.gmra.mxu0 %v1519_v51 }
 0x35d   : > { %v1520_v56 = vmax.f32 %v1402_v54, 0.0  ;;  %v1417_v58 = vadd.f32 %v2426_v55, %v3055_v17  ;;  %v3092_v54 = vld [vmem:[%s3178_s10] ss:$0 sm:$0xff] }
 0x35e   : > { %v1411_v59 = vpop.f32.mrf.mxu1 }
 0x35f   : > { %v1412_v60 = vadd.f32 %v3055_v17, %v1411_v59  ;;  %2501 = vmatprep.mubr.f32.mxu0 %v1520_v56  ;;  %v1523_v63 = vmax.f32 %v1417_v58, 0.0 }
 0x360   : > { %v2429_v61 = vpop.f32.mrf.mxu1  ;;  %2502 = vmatmul.mubr.f32.gmra.mxu0 %v1521_v57 }
 0x361   : > { %v1522_v62 = vmax.f32 %v1412_v60, 0.0  ;;  %v1427_v1 = vadd.f32 %v2429_v61, %v3055_v17 }
 0x362   : > { %v1421_v2 = vpop.f32.mrf.mxu1 }
 0x363   : > { %v1422_v3 = vadd.f32 %v3055_v17, %v1421_v2  ;;  %2504 = vmatprep.mubr.f32.mxu0 %v1522_v62  ;;  %v1525_v6 = vmax.f32 %v1427_v1, 0.0 }
 0x364   : > { %v2432_v4 = vpop.f32.mrf.mxu1  ;;  %2505 = vmatmul.mubr.f32.gmra.mxu0 %v1523_v63 }
 0x365   : > { %v1524_v5 = vmax.f32 %v1422_v3, 0.0  ;;  %v1437_v7 = vadd.f32 %v2432_v4, %v3055_v17 }
 0x366   : > { %v1431_v8 = vpop.f32.mrf.mxu1 }
 0x367   : > { %v1432_v9 = vadd.f32 %v3055_v17, %v1431_v8  ;;  %2507 = vmatprep.mubr.f32.mxu0 %v1524_v5  ;;  %v1527_v12 = vmax.f32 %v1437_v7, 0.0 }
 0x368   : > { %v2435_v10 = vpop.f32.mrf.mxu1  ;;  %2508 = vmatmul.mubr.f32.gmra.mxu0 %v1525_v6 }
 0x369   : > { %v1526_v11 = vmax.f32 %v1432_v9, 0.0  ;;  %v1447_v14 = vadd.f32 %v2435_v10, %v3055_v17 }
 0x36a   : > { %v1441_v15 = vpop.f32.mrf.mxu1 }
 0x36b   : > { %v1442_v16 = vadd.f32 %v3055_v17, %v1441_v15  ;;  %2510 = vmatprep.mubr.f32.mxu0 %v1526_v11  ;;  %v1529_v20 = vmax.f32 %v1447_v14, 0.0 }
 0x36c   : > { %v2438_v18 = vpop.f32.mrf.mxu1  ;;  %2511 = vmatmul.mubr.f32.gmra.mxu0 %v1527_v12 }
 0x36d   : > { %v1528_v19 = vmax.f32 %v1442_v16, 0.0  ;;  %v1457_v21 = vadd.f32 %v2438_v18, %v3055_v17 }
 0x36e   : > { %v1451_v22 = vpop.f32.mrf.mxu1 }
 0x36f   : > { %v1452_v23 = vadd.f32 %v3055_v17, %v1451_v22  ;;  %2513 = vmatprep.mubr.f32.mxu0 %v1528_v19  ;;  %v1531_v26 = vmax.f32 %v1457_v21, 0.0 }
 0x370   : > { %v2441_v49 = vpop.f32.mrf.mxu1  ;;  %2514 = vmatmul.mubr.f32.gmra.mxu0 %v1529_v20 }
 0x371   : > { %v1530_v24 = vmax.f32 %v1452_v23, 0.0  ;;  %v1467_v27 = vadd.f32 %v2441_v49, %v3055_v17 }
 0x372   : > { %v1461_v28 = vpop.f32.mrf.mxu1 }
 0x373   : > { %v1462_v25 = vadd.f32 %v3055_v17, %v1461_v28  ;;  %2516 = vmatprep.mubr.f32.mxu0 %v1530_v24  ;;  %v1533_v31 = vmax.f32 %v1467_v27, 0.0 }
 0x374   : > { %v2444_v29 = vpop.f32.mrf.mxu1  ;;  %2517 = vmatmul.mubr.f32.gmra.mxu0 %v1531_v26 }
 0x375   : > { %v1532_v30 = vmax.f32 %v1462_v25, 0.0  ;;  %v1477_v32 = vadd.f32 %v2444_v29, %v3055_v17 }
 0x376   : > { %v1471_v34 = vpop.f32.mrf.mxu1 }
 0x377   : > { %v1472_v33 = vadd.f32 %v3055_v17, %v1471_v34  ;;  %2519 = vmatprep.mubr.f32.mxu0 %v1532_v30  ;;  %v1535_v0 = vmax.f32 %v1477_v32, 0.0 }
 0x378   : > { %v2447_v35 = vpop.f32.mrf.mxu1  ;;  %2520 = vmatmul.mubr.f32.gmra.mxu0 %v1533_v31 }
 0x379   : > { %v1534_v36 = vmax.f32 %v1472_v33, 0.0  ;;  %v1487_v37 = vadd.f32 %v2447_v35, %v3055_v17 }
 0x37a   : > { %v1481_v38 = vpop.f32.mrf.mxu1 }
 0x37b   : > { %v1482_v39 = vadd.f32 %v3055_v17, %v1481_v38  ;;  %2522 = vmatprep.mubr.f32.mxu0 %v1534_v36  ;;  %v1537_v42 = vmax.f32 %v1487_v37, 0.0 }
 0x37c   : > { %v2450_v40 = vpop.f32.mrf.mxu1  ;;  %2523 = vmatmul.mubr.f32.gmra.mxu0 %v1535_v0 }
 0x37d   : > { %v1536_v41 = vmax.f32 %v1482_v39, 0.0  ;;  %v1497_v43 = vadd.f32 %v2450_v40, %v3055_v17 }
 0x37e   : > { %v1491_v44 = vpop.f32.mrf.mxu1 }
 0x37f   : > { %v1492_v45 = vadd.f32 %v3055_v17, %v1491_v44  ;;  %2525 = vmatprep.mubr.f32.mxu0 %v1536_v41  ;;  %v1539_v48 = vmax.f32 %v1497_v43, 0.0 }
 0x380   : > { %v2453_v46 = vpop.f32.mrf.mxu1  ;;  %2526 = vmatmul.mubr.f32.gmra.mxu0 %v1537_v42 }
 0x381   : > { %v1538_v47 = vmax.f32 %v1492_v45, 0.0  ;;  %v1507_v13 = vadd.f32 %v2453_v46, %v3055_v17 }
 0x382   : > { %v1501_v50 = vpop.f32.mrf.mxu1 }
 0x383   : > { %v1502_v51 = vadd.f32 %v3055_v17, %v1501_v50  ;;  %2528 = vmatprep.mubr.f32.mxu0 %v1538_v47  ;;  %v1541_v53 = vmax.f32 %v1507_v13, 0.0 }
 0x384   : > { %2529 = vmatmul.mubr.f32.gmra.mxu0 %v1539_v48 }
 0x385   : > { %v1540_v52 = vmax.f32 %v1502_v51, 0.0 }
 0x387   : > { %2531 = vmatprep.mubr.f32.mxu0 %v1540_v52 }
 0x388   : > { %2532 = vmatmul.mubr.f32.gmra.mxu0 %v1541_v53 }
 0x40c   : > { %v2488_v17 = vpop.f32.mrf.mxu0 }
 0x40d   : > { %v1637_v55 = vadd.f32 %v2488_v17, %v3092_v54 }
 0x40e   : > { %v1631_v56 = vpop.f32.mrf.mxu0 }
 0x40f   : > { %1791 = vst [vmem:[%s3099_s21 + $0x8] sm:$0xff] %v1637_v55  ;;  %v1632_v57 = vadd.f32 %v3092_v54, %v1631_v56 }
 0x410   : > { %v2491_v58 = vpop.f32.mrf.mxu0 }
 0x411   : > { %1790 = vst [vmem:[%s3099_s21] sm:$0xff] %v1632_v57  ;;  %v1647_v59 = vadd.f32 %v2491_v58, %v3092_v54 }
 0x412   : > { %v1641_v60 = vpop.f32.mrf.mxu0 }
 0x413   : > { %1793 = vst [vmem:[%s3099_s21 + $0x18] sm:$0xff] %v1647_v59  ;;  %v1642_v61 = vadd.f32 %v3092_v54, %v1641_v60 }
 0x414   : > { %v2494_v62 = vpop.f32.mrf.mxu0 }
 0x415   : > { %1792 = vst [vmem:[%s3099_s21 + $0x10] sm:$0xff] %v1642_v61  ;;  %v1657_v63 = vadd.f32 %v2494_v62, %v3092_v54 }
 0x416   : > { %v1651_v1 = vpop.f32.mrf.mxu0 }
 0x417   : > { %1795 = vst [vmem:[%s3099_s21 + $0x28] sm:$0xff] %v1657_v63  ;;  %v1652_v2 = vadd.f32 %v3092_v54, %v1651_v1 }
 0x418   : > { %v2497_v3 = vpop.f32.mrf.mxu0 }
 0x419   : > { %1794 = vst [vmem:[%s3099_s21 + $0x20] sm:$0xff] %v1652_v2  ;;  %v1667_v4 = vadd.f32 %v2497_v3, %v3092_v54 }
 0x41a   : > { %v1661_v5 = vpop.f32.mrf.mxu0 }
 0x41b   : > { %1797 = vst [vmem:[%s3099_s21 + $0x38] sm:$0xff] %v1667_v4  ;;  %v1662_v6 = vadd.f32 %v3092_v54, %v1661_v5 }
 0x41c   : > { %v2500_v7 = vpop.f32.mrf.mxu0 }
 0x41d   : > { %1796 = vst [vmem:[%s3099_s21 + $0x30] sm:$0xff] %v1662_v6  ;;  %v1677_v8 = vadd.f32 %v2500_v7, %v3092_v54 }
 0x41e   : > { %v1671_v9 = vpop.f32.mrf.mxu0 }
 0x41f   : > { %1799 = vst [vmem:[%s3099_s21 + $0x48] sm:$0xff] %v1677_v8  ;;  %v1672_v10 = vadd.f32 %v3092_v54, %v1671_v9 }
 0x420   : > { %v2503_v11 = vpop.f32.mrf.mxu0 }
 0x421   : > { %1798 = vst [vmem:[%s3099_s21 + $0x40] sm:$0xff] %v1672_v10  ;;  %v1687_v12 = vadd.f32 %v2503_v11, %v3092_v54 }
 0x422   : > { %v1681_v14 = vpop.f32.mrf.mxu0 }
 0x423   : > { %1801 = vst [vmem:[%s3099_s21 + $0x58] sm:$0xff] %v1687_v12  ;;  %v1682_v15 = vadd.f32 %v3092_v54, %v1681_v14 }
 0x424   : > { %v2506_v16 = vpop.f32.mrf.mxu0 }
 0x425   : > { %1800 = vst [vmem:[%s3099_s21 + $0x50] sm:$0xff] %v1682_v15  ;;  %v1697_v18 = vadd.f32 %v2506_v16, %v3092_v54 }
 0x426   : > { %v1691_v19 = vpop.f32.mrf.mxu0 }
 0x427   : > { %1803 = vst [vmem:[%s3099_s21 + $0x68] sm:$0xff] %v1697_v18  ;;  %v1692_v20 = vadd.f32 %v3092_v54, %v1691_v19 }
 0x428   : > { %v2509_v21 = vpop.f32.mrf.mxu0 }
 0x429   : > { %1802 = vst [vmem:[%s3099_s21 + $0x60] sm:$0xff] %v1692_v20  ;;  %v1707_v22 = vadd.f32 %v2509_v21, %v3092_v54 }
 0x42a   : > { %v1701_v23 = vpop.f32.mrf.mxu0 }
 0x42b   : > { %1805 = vst [vmem:[%s3099_s21 + $0x78] sm:$0xff] %v1707_v22  ;;  %v1702_v49 = vadd.f32 %v3092_v54, %v1701_v23 }
 0x42c   : > { %v2512_v24 = vpop.f32.mrf.mxu0 }
 0x42d   : > { %1804 = vst [vmem:[%s3099_s21 + $0x70] sm:$0xff] %v1702_v49  ;;  %v1717_v26 = vadd.f32 %v2512_v24, %v3092_v54 }
 0x42e   : > { %v1711_v27 = vpop.f32.mrf.mxu0 }
 0x42f   : > { %1807 = vst [vmem:[%s3099_s21 + $0x88] sm:$0xff] %v1717_v26  ;;  %v1712_v28 = vadd.f32 %v3092_v54, %v1711_v27 }
 0x430   : > { %v2515_v25 = vpop.f32.mrf.mxu0 }
 0x431   : > { %1806 = vst [vmem:[%s3099_s21 + $0x80] sm:$0xff] %v1712_v28  ;;  %v1727_v29 = vadd.f32 %v2515_v25, %v3092_v54 }
 0x432   : > { %v1721_v30 = vpop.f32.mrf.mxu0 }
 0x433   : > { %1809 = vst [vmem:[%s3099_s21 + $0x98] sm:$0xff] %v1727_v29  ;;  %v1722_v31 = vadd.f32 %v3092_v54, %v1721_v30 }
 0x434   : > { %v2518_v32 = vpop.f32.mrf.mxu0 }
 0x435   : > { %1808 = vst [vmem:[%s3099_s21 + $0x90] sm:$0xff] %v1722_v31  ;;  %v1737_v34 = vadd.f32 %v2518_v32, %v3092_v54 }
 0x436   : > { %v1731_v33 = vpop.f32.mrf.mxu0 }
 0x437   : > { %1811 = vst [vmem:[%s3099_s21 + $0xa8] sm:$0xff] %v1737_v34  ;;  %v1732_v35 = vadd.f32 %v3092_v54, %v1731_v33 }
 0x438   : > { %v2521_v36 = vpop.f32.mrf.mxu0 }
 0x439   : > { %1810 = vst [vmem:[%s3099_s21 + $0xa0] sm:$0xff] %v1732_v35  ;;  %v1747_v0 = vadd.f32 %v2521_v36, %v3092_v54 }
 0x43a   : > { %v1741_v37 = vpop.f32.mrf.mxu0 }
 0x43b   : > { %1813 = vst [vmem:[%s3099_s21 + $0xb8] sm:$0xff] %v1747_v0  ;;  %v1742_v38 = vadd.f32 %v3092_v54, %v1741_v37 }
 0x43c   : > { %v2524_v39 = vpop.f32.mrf.mxu0 }
 0x43d   : > { %1812 = vst [vmem:[%s3099_s21 + $0xb0] sm:$0xff] %v1742_v38  ;;  %v1757_v40 = vadd.f32 %v2524_v39, %v3092_v54 }
 0x43e   : > { %v1751_v41 = vpop.f32.mrf.mxu0 }
 0x43f   : > { %1815 = vst [vmem:[%s3099_s21 + $0xc8] sm:$0xff] %v1757_v40  ;;  %v1752_v42 = vadd.f32 %v3092_v54, %v1751_v41 }
 0x440   : > { %v2527_v43 = vpop.f32.mrf.mxu0 }
 0x441   : > { %1814 = vst [vmem:[%s3099_s21 + $0xc0] sm:$0xff] %v1752_v42  ;;  %v1767_v44 = vadd.f32 %v2527_v43, %v3092_v54 }
 0x442   : > { %v1761_v45 = vpop.f32.mrf.mxu0 }
 0x443   : > { %1817 = vst [vmem:[%s3099_s21 + $0xd8] sm:$0xff] %v1767_v44  ;;  %v1762_v46 = vadd.f32 %v3092_v54, %v1761_v45 }
 0x444   : > { %v2530_v47 = vpop.f32.mrf.mxu0 }
 0x445   : > { %1816 = vst [vmem:[%s3099_s21 + $0xd0] sm:$0xff] %v1762_v46  ;;  %v1777_v48 = vadd.f32 %v2530_v47, %v3092_v54 }
 0x446   : > { %v1771_v13 = vpop.f32.mrf.mxu0 }
 0x447   : > { %1819 = vst [vmem:[%s3099_s21 + $0xe8] sm:$0xff] %v1777_v48  ;;  %v1772_v50 = vadd.f32 %v3092_v54, %v1771_v13 }
 0x448   : > { %v2533_v51 = vpop.f32.mrf.mxu0 }
 0x449   : > { %1818 = vst [vmem:[%s3099_s21 + $0xe0] sm:$0xff] %v1772_v50  ;;  %v1787_v52 = vadd.f32 %v2533_v51, %v3092_v54 }
 0x44a   : > { %v1781_v53 = vpop.f32.mrf.mxu0 }
 0x44b   : > { %1821 = vst [vmem:[%s3099_s21 + $0xf8] sm:$0xff] %v1787_v52  ;;  %v1782_v17 = vadd.f32 %v3092_v54, %v1781_v53 }
 0x44d   : > { %1820 = vst [vmem:[%s3099_s21 + $0xf0] sm:$0xff] %v1782_v17 }
 0x44e PF: > { %s21_s17 = sadd.s32 1, %s2580_s17  }
 0x44f   : > { %p18_p4 = scmp.ge.s32.totalorder %s21_s17, 4  }
 0x451   :  { %20 = sbr.rel (!%p18_p4) target bundleno = 1 (0x1), region = 94 }

</bundles_post_ra>
